<compile_context>
chip_gen: v5e
topology: v5e:2x2
jax: 0.10.0
libtpu: 0.0.40
codegen_flags: <defaults>
</compile_context>

<pallas_src>
import functools

import jax
import jax.numpy as jnp
from jax import lax
from jax.experimental import pallas as pl
from jax.experimental.pallas import tpu as pltpu

# Module hyper-params (PROD = False)
BLOCK_SIZE = 128
N_EMBD = 64
NUM_HEADS = 4
HEAD_SIZE = N_EMBD // NUM_HEADS   # 16


def _mha_kernel(x_ref, wqkv_ref, wp_ref, bp_ref, o_ref, *, num_heads, head_size):
    """One grid step = one batch element.

    x_ref    : (T, C)          VMEM (batch dim squeezed by the BlockSpec)
    wqkv_ref : (C, 3*H*hs)     packed [Wq*scale | Wk | Wv], head-major columns
    wp_ref   : (H*hs, C)       output projection
    bp_ref   : (1, C)          output projection bias
    o_ref    : (T, C)          output block (batch dim squeezed)
    """
    T, C = x_ref.shape
    H, hs = num_heads, head_size
    hp = lax.Precision.HIGHEST

    x = x_ref[...]                                   # (T, C)
    wqkv = wqkv_ref[...]                             # (C, 3*H*hs)
    wp = wp_ref[...].astype(jnp.float32)             # (H*hs, C)

    # Single fused, lane-dense QKV projection (attention scale already folded
    # into the Q columns at pack time).
    qkv = jnp.dot(x, wqkv, precision=hp,
                  preferred_element_type=jnp.float32)         # (T, 3*H*hs)

    # Causal mask as an iota compare — no materialized bias tensor.
    row = lax.broadcasted_iota(jnp.int32, (T, T), 0)
    col = lax.broadcasted_iota(jnp.int32, (T, T), 1)
    causal = col <= row

    acc = jnp.zeros((T, C), jnp.float32)
    for h in range(H):                                # H is small & static
        q = qkv[:, h * hs:(h + 1) * hs]                       # (T, hs)
        k = qkv[:, (H + h) * hs:(H + h + 1) * hs]             # (T, hs)
        v = qkv[:, (2 * H + h) * hs:(2 * H + h + 1) * hs]     # (T, hs)

        # q @ k^T via a trans-B contraction: no explicit transpose of k.
        s = lax.dot_general(q, k, (((1,), (1,)), ((), ())),
                            precision=hp,
                            preferred_element_type=jnp.float32)   # (T, T)
        s = jnp.where(causal, s, -1e30)
        s = s - jnp.max(s, axis=-1, keepdims=True)
        p = jnp.exp(s)
        p = p / jnp.sum(p, axis=-1, keepdims=True)    # exact divide (EUP has slack)
        # TODO(synk): attention-weight dropout (train mode) would be applied here.

        head_out = jnp.dot(p, v, precision=hp,
                           preferred_element_type=jnp.float32)    # (T, hs)
        # Fold the head-concat into per-head partial output projections.
        acc = acc + jnp.dot(head_out, wp[h * hs:(h + 1) * hs, :],
                            precision=hp,
                            preferred_element_type=jnp.float32)   # (T, C)

    out = acc + bp_ref[...].astype(jnp.float32)       # (T, C)
    o_ref[...] = out.astype(o_ref.dtype)
    # TODO(synk): output dropout (train mode) would be applied here.


def pack_mha_params(wq, wk, wv, w_proj, b_proj):
    """One-time parameter packing (call at init, NOT per forward pass).

    wq/wk/wv: (H, C, hs); w_proj: (H*hs, C); b_proj: (C,).
    Returns (w_qkv (C, 3*H*hs), w_proj (H*hs, C), b_proj2 (1, C)).
    The 1/sqrt(hs) attention scale is folded into the Q columns.
    """
    H, C, hs = wq.shape
    scale = float(hs) ** -0.5

    def _flat(w):                                     # (H, C, hs) -> (C, H*hs)
        return jnp.transpose(w, (1, 0, 2)).reshape(C, H * hs)

    w_qkv = jnp.concatenate([_flat(wq) * scale, _flat(wk), _flat(wv)], axis=1)
    return w_qkv, w_proj, b_proj.reshape(1, C)


def multi_head_attention(x, w_qkv, w_proj, b_proj2, *, num_heads):
    """x: (B, T, C); packed params from pack_mha_params(). Returns (B, T, C)."""
    B, T, C = x.shape
    H = num_heads
    hs = w_qkv.shape[1] // (3 * H)

    kernel = functools.partial(_mha_kernel, num_heads=H, head_size=hs)
    return pl.pallas_call(
        kernel,
        out_shape=jax.ShapeDtypeStruct((B, T, C), x.dtype),
        grid_spec=pltpu.PrefetchScalarGridSpec(
            num_scalar_prefetch=0,
            grid=(B,),                                         # one batch element / step
            in_specs=[
                pl.BlockSpec((None, T, C), lambda b: (b, 0, 0)),       # x[b]
                pl.BlockSpec((C, 3 * H * hs), lambda b: (0, 0)),       # constant block:
                pl.BlockSpec((H * hs, C), lambda b: (0, 0)),           #  weights not
                pl.BlockSpec((1, C), lambda b: (0, 0)),                #  re-DMA'd per step
            ],
            out_specs=pl.BlockSpec((None, T, C), lambda b: (b, 0, 0)),  # direct (B,T,C)
        ),
        compiler_params=pltpu.CompilerParams(
            dimension_semantics=("parallel",)),                # both TCs on v7x
    )(x, w_qkv, w_proj, b_proj2)


def _reference(x, wq, wk, wv, w_proj, b_proj):
    """Pure-JAX reference replicating the PyTorch forward (eval mode), full f32."""
    H, _, hs = wq.shape
    T = x.shape[1]
    hp = lax.Precision.HIGHEST
    mask = jnp.tril(jnp.ones((T, T), dtype=bool))
    outs = []
    for h in range(H):
        q = jnp.matmul(x, wq[h], precision=hp)
        k = jnp.matmul(x, wk[h], precision=hp)
        v = jnp.matmul(x, wv[h], precision=hp)
        wei = jnp.matmul(q, jnp.swapaxes(k, -2, -1), precision=hp) * (hs ** -0.5)
        wei = jnp.where(mask, wei, -jnp.inf)
        wei = jax.nn.softmax(wei, axis=-1)
        outs.append(jnp.matmul(wei, v, precision=hp))
    cat = jnp.concatenate(outs, axis=-1)
    return jnp.matmul(cat, w_proj, precision=hp) + b_proj


if __name__ == "__main__":
    key = jax.random.PRNGKey(0)
    B, T, C, H, hs = 2, 8, N_EMBD, NUM_HEADS, HEAD_SIZE
    assert T <= BLOCK_SIZE

    kx, kq, kk, kv, kp, kb = jax.random.split(key, 6)
    x = jax.random.normal(kx, (B, T, C), dtype=jnp.float32)
    # Deterministic parameter init (synthetic; shapes match the nn.Linear fields).
    wq = jax.random.normal(kq, (H, C, hs), dtype=jnp.float32) * 0.1
    wk = jax.random.normal(kk, (H, C, hs), dtype=jnp.float32) * 0.1
    wv = jax.random.normal(kv, (H, C, hs), dtype=jnp.float32) * 0.1
    w_proj = jax.random.normal(kp, (H * hs, C), dtype=jnp.float32) * 0.1
    b_proj = jax.random.normal(kb, (C,), dtype=jnp.float32) * 0.1

    # One-time packing (analogous to nn.Module __init__) — not per call.
    w_qkv, w_proj_p, b_proj2 = pack_mha_params(wq, wk, wv, w_proj, b_proj)

    out = multi_head_attention(x, w_qkv, w_proj_p, b_proj2, num_heads=H)
    out = jax.block_until_ready(out)

    ref = _reference(x, wq, wk, wv, w_proj, b_proj)
    assert out.shape == (B, T, C)
    assert jnp.allclose(out, ref, atol=1e-3, rtol=1e-3), "mismatch vs reference"

    print("KERNEL_OK")
</pallas_src>

<mosaic_0001>
module attributes {stable_mosaic.version = 11 : i64} {
  func.func @_mha_kernel(%arg0: i32, %arg1: memref<1x8x64xf32, #tpu.memory_space<vmem>>, %arg2: memref<64x192xf32, #tpu.memory_space<vmem>>, %arg3: memref<64x64xf32, #tpu.memory_space<vmem>>, %arg4: memref<1x64xf32, #tpu.memory_space<vmem>>, %arg5: memref<1x8x64xf32, #tpu.memory_space<vmem>>) attributes {dimension_semantics = [#tpu.dimension_semantics<parallel>], iteration_bounds = array<i64: 2>, scalar_prefetch = 0 : i64, scratch_operands = 0 : i64, tpu.core_type = #tpu.core_type<tc>, window_params = [{transform_indices = @transform_0, window_bounds = array<i64: 1, 8, 64>}, {pipeline_mode = #tpu.pipeline_mode<synchronous>, transform_indices = @transform_1, window_bounds = array<i64: 64, 192>}, {pipeline_mode = #tpu.pipeline_mode<synchronous>, transform_indices = @transform_2, window_bounds = array<i64: 64, 64>}, {pipeline_mode = #tpu.pipeline_mode<synchronous>, transform_indices = @transform_3, window_bounds = array<i64: 1, 64>}, {transform_indices = @transform_4, window_bounds = array<i64: 1, 8, 64>}]} {
    %c0 = arith.constant 0 : index
    %c0_0 = arith.constant 0 : index
    %c0_1 = arith.constant 0 : index
    %0 = vector.load %arg1[%c0, %c0_0, %c0_1] : memref<1x8x64xf32, #tpu.memory_space<vmem>>, vector<1x8x64xf32>
    %1 = vector.shape_cast %0 : vector<1x8x64xf32> to vector<8x64xf32>
    %c0_2 = arith.constant 0 : index
    %c0_3 = arith.constant 0 : index
    %2 = vector.load %arg2[%c0_2, %c0_3] : memref<64x192xf32, #tpu.memory_space<vmem>>, vector<64x192xf32>
    %c0_4 = arith.constant 0 : index
    %c0_5 = arith.constant 0 : index
    %3 = vector.load %arg3[%c0_4, %c0_5] : memref<64x64xf32, #tpu.memory_space<vmem>>, vector<64x64xf32>
    %cst = arith.constant dense<0.000000e+00> : vector<8x192xf32>
    %4 = tpu.matmul %1, %2, %cst {dimension_numbers = #tpu.dot_dimension_numbers<[1], [0], [0], [1], [0, 0, 1, 1], [], []>, precision = #tpu.contract_precision<fp32>} : vector<8x64xf32>, vector<64x192xf32>, vector<8x192xf32> -> vector<8x192xf32>
    %5 = tpu.iota {dimensions = array<i32: 0>} : vector<8x8xi32>
    %6 = tpu.iota {dimensions = array<i32: 1>} : vector<8x8xi32>
    %7 = arith.cmpi sle, %6, %5 : vector<8x8xi32>
    %cst_6 = arith.constant 0.000000e+00 : f32
    %8 = vector.broadcast %cst_6 : f32 to vector<8x64xf32>
    %9 = vector.extract_strided_slice %4 {offsets = [0, 0], sizes = [8, 16], strides = [1, 1]} : vector<8x192xf32> to vector<8x16xf32>
    %10 = vector.extract_strided_slice %4 {offsets = [0, 64], sizes = [8, 16], strides = [1, 1]} : vector<8x192xf32> to vector<8x16xf32>
    %11 = vector.extract_strided_slice %4 {offsets = [0, 128], sizes = [8, 16], strides = [1, 1]} : vector<8x192xf32> to vector<8x16xf32>
    %cst_7 = arith.constant dense<0.000000e+00> : vector<8x8xf32>
    %12 = tpu.matmul %9, %10, %cst_7 {dimension_numbers = #tpu.dot_dimension_numbers<[1], [1], [0], [0], [0, 0, 1, 0], [], []>, precision = #tpu.contract_precision<fp32>} : vector<8x16xf32>, vector<8x16xf32>, vector<8x8xf32> -> vector<8x8xf32>
    %cst_8 = arith.constant -1.000000e+30 : f32
    %13 = vector.broadcast %cst_8 : f32 to vector<8x8xf32>
    %14 = arith.select %7, %12, %13 : vector<8x8xi1>, vector<8x8xf32>
    %cst_9 = arith.constant dense<0xFF800000> : vector<8xf32>
    %15 = vector.multi_reduction <maximumf>, %14, %cst_9 [1] : vector<8x8xf32> to vector<8xf32>
    %16 = vector.shape_cast %15 : vector<8xf32> to vector<8x1xf32>
    %17 = vector.broadcast %16 : vector<8x1xf32> to vector<8x8xf32>
    %18 = arith.subf %14, %17 : vector<8x8xf32>
    %19 = math.exp %18 : vector<8x8xf32>
    %cst_10 = arith.constant dense<0.000000e+00> : vector<8xf32>
    %20 = vector.multi_reduction <add>, %19, %cst_10 [1] : vector<8x8xf32> to vector<8xf32>
    %21 = vector.shape_cast %20 : vector<8xf32> to vector<8x1xf32>
    %22 = vector.broadcast %21 : vector<8x1xf32> to vector<8x8xf32>
    %23 = arith.divf %19, %22 : vector<8x8xf32>
    %cst_11 = arith.constant dense<0.000000e+00> : vector<8x16xf32>
    %24 = tpu.matmul %23, %11, %cst_11 {dimension_numbers = #tpu.dot_dimension_numbers<[1], [0], [0], [1], [0, 0, 1, 1], [], []>, precision = #tpu.contract_precision<fp32>} : vector<8x8xf32>, vector<8x16xf32>, vector<8x16xf32> -> vector<8x16xf32>
    %25 = vector.extract_strided_slice %3 {offsets = [0, 0], sizes = [16, 64], strides = [1, 1]} : vector<64x64xf32> to vector<16x64xf32>
    %cst_12 = arith.constant dense<0.000000e+00> : vector<8x64xf32>
    %26 = tpu.matmul %24, %25, %cst_12 {dimension_numbers = #tpu.dot_dimension_numbers<[1], [0], [0], [1], [0, 0, 1, 1], [], []>, precision = #tpu.contract_precision<fp32>} : vector<8x16xf32>, vector<16x64xf32>, vector<8x64xf32> -> vector<8x64xf32>
    %27 = arith.addf %8, %26 : vector<8x64xf32>
    %28 = vector.extract_strided_slice %4 {offsets = [0, 16], sizes = [8, 16], strides = [1, 1]} : vector<8x192xf32> to vector<8x16xf32>
    %29 = vector.extract_strided_slice %4 {offsets = [0, 80], sizes = [8, 16], strides = [1, 1]} : vector<8x192xf32> to vector<8x16xf32>
    %30 = vector.extract_strided_slice %4 {offsets = [0, 144], sizes = [8, 16], strides = [1, 1]} : vector<8x192xf32> to vector<8x16xf32>
    %cst_13 = arith.constant dense<0.000000e+00> : vector<8x8xf32>
    %31 = tpu.matmul %28, %29, %cst_13 {dimension_numbers = #tpu.dot_dimension_numbers<[1], [1], [0], [0], [0, 0, 1, 0], [], []>, precision = #tpu.contract_precision<fp32>} : vector<8x16xf32>, vector<8x16xf32>, vector<8x8xf32> -> vector<8x8xf32>
    %cst_14 = arith.constant -1.000000e+30 : f32
    %32 = vector.broadcast %cst_14 : f32 to vector<8x8xf32>
    %33 = arith.select %7, %31, %32 : vector<8x8xi1>, vector<8x8xf32>
    %cst_15 = arith.constant dense<0xFF800000> : vector<8xf32>
    %34 = vector.multi_reduction <maximumf>, %33, %cst_15 [1] : vector<8x8xf32> to vector<8xf32>
    %35 = vector.shape_cast %34 : vector<8xf32> to vector<8x1xf32>
    %36 = vector.broadcast %35 : vector<8x1xf32> to vector<8x8xf32>
    %37 = arith.subf %33, %36 : vector<8x8xf32>
    %38 = math.exp %37 : vector<8x8xf32>
    %cst_16 = arith.constant dense<0.000000e+00> : vector<8xf32>
    %39 = vector.multi_reduction <add>, %38, %cst_16 [1] : vector<8x8xf32> to vector<8xf32>
    %40 = vector.shape_cast %39 : vector<8xf32> to vector<8x1xf32>
    %41 = vector.broadcast %40 : vector<8x1xf32> to vector<8x8xf32>
    %42 = arith.divf %38, %41 : vector<8x8xf32>
    %cst_17 = arith.constant dense<0.000000e+00> : vector<8x16xf32>
    %43 = tpu.matmul %42, %30, %cst_17 {dimension_numbers = #tpu.dot_dimension_numbers<[1], [0], [0], [1], [0, 0, 1, 1], [], []>, precision = #tpu.contract_precision<fp32>} : vector<8x8xf32>, vector<8x16xf32>, vector<8x16xf32> -> vector<8x16xf32>
    %44 = vector.extract_strided_slice %3 {offsets = [16, 0], sizes = [16, 64], strides = [1, 1]} : vector<64x64xf32> to vector<16x64xf32>
    %cst_18 = arith.constant dense<0.000000e+00> : vector<8x64xf32>
    %45 = tpu.matmul %43, %44, %cst_18 {dimension_numbers = #tpu.dot_dimension_numbers<[1], [0], [0], [1], [0, 0, 1, 1], [], []>, precision = #tpu.contract_precision<fp32>} : vector<8x16xf32>, vector<16x64xf32>, vector<8x64xf32> -> vector<8x64xf32>
    %46 = arith.addf %27, %45 : vector<8x64xf32>
    %47 = vector.extract_strided_slice %4 {offsets = [0, 32], sizes = [8, 16], strides = [1, 1]} : vector<8x192xf32> to vector<8x16xf32>
    %48 = vector.extract_strided_slice %4 {offsets = [0, 96], sizes = [8, 16], strides = [1, 1]} : vector<8x192xf32> to vector<8x16xf32>
    %49 = vector.extract_strided_slice %4 {offsets = [0, 160], sizes = [8, 16], strides = [1, 1]} : vector<8x192xf32> to vector<8x16xf32>
    %cst_19 = arith.constant dense<0.000000e+00> : vector<8x8xf32>
    %50 = tpu.matmul %47, %48, %cst_19 {dimension_numbers = #tpu.dot_dimension_numbers<[1], [1], [0], [0], [0, 0, 1, 0], [], []>, precision = #tpu.contract_precision<fp32>} : vector<8x16xf32>, vector<8x16xf32>, vector<8x8xf32> -> vector<8x8xf32>
    %cst_20 = arith.constant -1.000000e+30 : f32
    %51 = vector.broadcast %cst_20 : f32 to vector<8x8xf32>
    %52 = arith.select %7, %50, %51 : vector<8x8xi1>, vector<8x8xf32>
    %cst_21 = arith.constant dense<0xFF800000> : vector<8xf32>
    %53 = vector.multi_reduction <maximumf>, %52, %cst_21 [1] : vector<8x8xf32> to vector<8xf32>
    %54 = vector.shape_cast %53 : vector<8xf32> to vector<8x1xf32>
    %55 = vector.broadcast %54 : vector<8x1xf32> to vector<8x8xf32>
    %56 = arith.subf %52, %55 : vector<8x8xf32>
    %57 = math.exp %56 : vector<8x8xf32>
    %cst_22 = arith.constant dense<0.000000e+00> : vector<8xf32>
    %58 = vector.multi_reduction <add>, %57, %cst_22 [1] : vector<8x8xf32> to vector<8xf32>
    %59 = vector.shape_cast %58 : vector<8xf32> to vector<8x1xf32>
    %60 = vector.broadcast %59 : vector<8x1xf32> to vector<8x8xf32>
    %61 = arith.divf %57, %60 : vector<8x8xf32>
    %cst_23 = arith.constant dense<0.000000e+00> : vector<8x16xf32>
    %62 = tpu.matmul %61, %49, %cst_23 {dimension_numbers = #tpu.dot_dimension_numbers<[1], [0], [0], [1], [0, 0, 1, 1], [], []>, precision = #tpu.contract_precision<fp32>} : vector<8x8xf32>, vector<8x16xf32>, vector<8x16xf32> -> vector<8x16xf32>
    %63 = vector.extract_strided_slice %3 {offsets = [32, 0], sizes = [16, 64], strides = [1, 1]} : vector<64x64xf32> to vector<16x64xf32>
    %cst_24 = arith.constant dense<0.000000e+00> : vector<8x64xf32>
    %64 = tpu.matmul %62, %63, %cst_24 {dimension_numbers = #tpu.dot_dimension_numbers<[1], [0], [0], [1], [0, 0, 1, 1], [], []>, precision = #tpu.contract_precision<fp32>} : vector<8x16xf32>, vector<16x64xf32>, vector<8x64xf32> -> vector<8x64xf32>
    %65 = arith.addf %46, %64 : vector<8x64xf32>
    %66 = vector.extract_strided_slice %4 {offsets = [0, 48], sizes = [8, 16], strides = [1, 1]} : vector<8x192xf32> to vector<8x16xf32>
    %67 = vector.extract_strided_slice %4 {offsets = [0, 112], sizes = [8, 16], strides = [1, 1]} : vector<8x192xf32> to vector<8x16xf32>
    %68 = vector.extract_strided_slice %4 {offsets = [0, 176], sizes = [8, 16], strides = [1, 1]} : vector<8x192xf32> to vector<8x16xf32>
    %cst_25 = arith.constant dense<0.000000e+00> : vector<8x8xf32>
    %69 = tpu.matmul %66, %67, %cst_25 {dimension_numbers = #tpu.dot_dimension_numbers<[1], [1], [0], [0], [0, 0, 1, 0], [], []>, precision = #tpu.contract_precision<fp32>} : vector<8x16xf32>, vector<8x16xf32>, vector<8x8xf32> -> vector<8x8xf32>
    %cst_26 = arith.constant -1.000000e+30 : f32
    %70 = vector.broadcast %cst_26 : f32 to vector<8x8xf32>
    %71 = arith.select %7, %69, %70 : vector<8x8xi1>, vector<8x8xf32>
    %cst_27 = arith.constant dense<0xFF800000> : vector<8xf32>
    %72 = vector.multi_reduction <maximumf>, %71, %cst_27 [1] : vector<8x8xf32> to vector<8xf32>
    %73 = vector.shape_cast %72 : vector<8xf32> to vector<8x1xf32>
    %74 = vector.broadcast %73 : vector<8x1xf32> to vector<8x8xf32>
    %75 = arith.subf %71, %74 : vector<8x8xf32>
    %76 = math.exp %75 : vector<8x8xf32>
    %cst_28 = arith.constant dense<0.000000e+00> : vector<8xf32>
    %77 = vector.multi_reduction <add>, %76, %cst_28 [1] : vector<8x8xf32> to vector<8xf32>
    %78 = vector.shape_cast %77 : vector<8xf32> to vector<8x1xf32>
    %79 = vector.broadcast %78 : vector<8x1xf32> to vector<8x8xf32>
    %80 = arith.divf %76, %79 : vector<8x8xf32>
    %cst_29 = arith.constant dense<0.000000e+00> : vector<8x16xf32>
    %81 = tpu.matmul %80, %68, %cst_29 {dimension_numbers = #tpu.dot_dimension_numbers<[1], [0], [0], [1], [0, 0, 1, 1], [], []>, precision = #tpu.contract_precision<fp32>} : vector<8x8xf32>, vector<8x16xf32>, vector<8x16xf32> -> vector<8x16xf32>
    %82 = vector.extract_strided_slice %3 {offsets = [48, 0], sizes = [16, 64], strides = [1, 1]} : vector<64x64xf32> to vector<16x64xf32>
    %cst_30 = arith.constant dense<0.000000e+00> : vector<8x64xf32>
    %83 = tpu.matmul %81, %82, %cst_30 {dimension_numbers = #tpu.dot_dimension_numbers<[1], [0], [0], [1], [0, 0, 1, 1], [], []>, precision = #tpu.contract_precision<fp32>} : vector<8x16xf32>, vector<16x64xf32>, vector<8x64xf32> -> vector<8x64xf32>
    %84 = arith.addf %65, %83 : vector<8x64xf32>
    %c0_31 = arith.constant 0 : index
    %c0_32 = arith.constant 0 : index
    %85 = vector.load %arg4[%c0_31, %c0_32] : memref<1x64xf32, #tpu.memory_space<vmem>>, vector<1x64xf32>
    %86 = vector.broadcast %85 : vector<1x64xf32> to vector<8x64xf32>
    %87 = arith.addf %84, %86 : vector<8x64xf32>
    %c0_33 = arith.constant 0 : index
    %c0_34 = arith.constant 0 : index
    %c0_35 = arith.constant 0 : index
    %88 = vector.load %arg5[%c0_33, %c0_34, %c0_35] : memref<1x8x64xf32, #tpu.memory_space<vmem>>, vector<1x8x64xf32>
    %89 = vector.shape_cast %88 : vector<1x8x64xf32> to vector<8x64xf32>
    %90 = vector.shape_cast %87 : vector<8x64xf32> to vector<1x8x64xf32>
    tpu.vector_store %arg5[%c0_33, %c0_34, %c0_35], %90 {strides = array<i32>} : memref<1x8x64xf32, #tpu.memory_space<vmem>>, vector<1x8x64xf32>,
    return
  }
  func.func @transform_0(%arg0: i32) -> (i32, i32, i32) {
    %c0_i32 = arith.constant 0 : i32
    %c0_i32_0 = arith.constant 0 : i32
    %c0_i32_1 = arith.constant 0 : i32
    return %arg0, %c0_i32, %c0_i32_0 : i32, i32, i32
  }
  func.func @transform_1(%arg0: i32) -> (i32, i32) {
    %c0_i32 = arith.constant 0 : i32
    %c0_i32_0 = arith.constant 0 : i32
    %c0_i32_1 = arith.constant 0 : i32
    return %c0_i32, %c0_i32_0 : i32, i32
  }
  func.func @transform_2(%arg0: i32) -> (i32, i32) {
    %c0_i32 = arith.constant 0 : i32
    %c0_i32_0 = arith.constant 0 : i32
    %c0_i32_1 = arith.constant 0 : i32
    return %c0_i32, %c0_i32_0 : i32, i32
  }
  func.func @transform_3(%arg0: i32) -> (i32, i32) {
    %c0_i32 = arith.constant 0 : i32
    %c0_i32_0 = arith.constant 0 : i32
    %c0_i32_1 = arith.constant 0 : i32
    return %c0_i32, %c0_i32_0 : i32, i32
  }
  func.func @transform_4(%arg0: i32) -> (i32, i32, i32) {
    %c0_i32 = arith.constant 0 : i32
    %c0_i32_0 = arith.constant 0 : i32
    %c0_i32_1 = arith.constant 0 : i32
    return %arg0, %c0_i32, %c0_i32_0 : i32, i32, i32
  }
}

</mosaic_0001>

<bundles_post_ra>
// kernel: tpu_custom_call.1
= control target key start
LH: loop header
LB: loop body
LE: loop exit
PB: predicated region body
PF: predicated region fallthrough
CT: control target
= control target key end

     0   :  { %9 = vsyncpa [#allocation3], 0  ;;  %s3553_s0 = inlined_call_operand.hbm [shape: f32[2,8,64], index: 0, kind: input, shape index: {}]   ;;  %s3554_s1 = inlined_call_operand.hbm [shape: f32[64,192], index: 1, kind: input, shape index: {}]   ;;  %s3555_s2 = inlined_call_operand.hbm [shape: f32[64,64], index: 2, kind: input, shape index: {}]   ;;  %s3556_s3 = inlined_call_operand.vmem [shape: f32[1,64], index: 3, kind: input, shape index: {}]   ;;  %s3557_s4 = inlined_call_operand.hbm [shape: f32[2,8,64], index: 4, kind: output, shape index: {}]  }
   0x1   :  { %11 = vsyncpa [#allocation3 + $0x1], 0 }
   0x2   :  { %12 = vsyncpa [#allocation6], 0 }
   0x3   :  { %13 = vsyncpa [#allocation4], 0 }
   0x4   :  { %15 = vsyncpa [#allocation4 + $0x1], 0  ;;  %s3151_s15 = smov 0   ;;  %s3153_s16 = smov 0  }
   0x5   :  { %s3155_s17 = smov 0   ;;  %s3157_s18 = smov 0  }
   0x6 LB: > { %s152_s21 = sshll.u32 %s3554_s1, 4  ;;  %s3175_s22 = sadd.s32 4294967295, %s3111_s18   ;;  %s3111_s18 = sphi %s3157_s18, %s3568_s18   ;;  %s3107_s17 = sphi %s3155_s17, %s3567_s17   ;;  %s3103_s16 = sphi %s3153_s16, %s3566_s16   ;;  %s3099_s15 = sphi %s3151_s15, %s3565_s15   ;;  %s153_s21 = int_to_ptr.hbm [resolvable:$true] %s152_s21 }
   0x7   : > { %p2841_p0 = scmp.ge.s32.totalorder %s3111_s18, 1  ;;  %p42_p1 = scmp.eq.s32.totalorder %s3175_s22, 0 }
   0x8   : > { %p141_p2 = scmp.lt.s32.totalorder %s3111_s18, 3  ;;  %s3113_s24 = smov [#allocation5]  }
   0x9   : > { %s154_s25 = sshll.u32 %s3113_s24, 4  ;;  %s166_s28 = sshll.u32 %s3555_s2, 4  ;;  %s155_s25 = int_to_ptr.vmem [resolvable:$true] %s154_s25  ;;  %s167_s28 = int_to_ptr.hbm [resolvable:$true] %s166_s28 }
   0xa   : > { %p3180_p3 = pnand %p2841_p0, %p141_p2  ;;  %s3114_s29 = smov [#allocation7]  }
   0xb   : > { %s168_s30 = sshll.u32 %s3114_s29, 4  ;;  %s3115_s5 = smov 256   ;;  %s169_s30 = int_to_ptr.vmem [resolvable:$true] %s168_s30 }
   0xc   : > { %p2868_p4 = pneg %p3180_p3  ;;  %s3116_s6 = smov 16  }
   0xd   : > { %s3117_s7 = smov 128   ;;  %s3118_s8 = smov 8  }
   0xe   : > { %p2869_p6 = pnand %p2868_p4, %p42_p1  ;;  %s2840_s9 = sadd.s32 4294967294, %s3111_s18  }
   0xf   : > { %s3194_s10 = sadd.s32 1, %s3111_s18   ;;  %s28_s12 = sadd.s32 1, %s3107_s17 }
  0x10   : > { %2871 = dma.hbm_to_vmem [thread:$0]  (!%p2869_p6), %s153_s21, 2048, %s155_s25, [#allocation6], %s3115_s5, %s3115_s5, %s3116_s6  }
  0x11   : > { %2874 = dma.hbm_to_vmem [thread:$0]  (!%p2869_p6), %s167_s28, 1024, %s169_s30, [#allocation6], %s3117_s7, %s3117_s7, %s3118_s8  }
  0x12   : > { %s25_s11 = ssub.s32 %s3111_s18, %s3194_s10  ;;  %p35_p8 = scmp.ne.s32.totalorder %s3107_s17, %s3103_s16 }
  0x13   : > { %p26_p7 = scmp.eq.s32.totalorder %s25_s11, 0  ;;  %p36_p9 = scmp.eq.s32.totalorder %s3111_s18, 0 }
  0x14   : > { %p41_p10 = scmp.ne.s32.totalorder %s3103_s16, %s3099_s15  ;;  %p128_p13 = scmp.eq.s32.totalorder %s3175_s22, 1 }
  0x15   : > { %s3205_s13 = scalar_select %p26_p7, %s3107_s17, %s28_s12  }
  0x16   : > { %p3207_p11 = por %p36_p9, %p35_p8  ;;  %p3213_p12 = por %p42_p1, %p41_p10 }
  0x17   : > { %p134_p0 = scmp.eq.s32.totalorder %s2840_s9, 1  ;;  %p2885_p2 = scmp.lt.s32.totalorder %s3111_s18, 2 }
  0x18   : > { %s185_s20 = sand.u32 1, %s3107_s17   ;;  %p3220_p4 = por %p128_p13, %p35_p8 }
  0x19   : > { %p3224_p6 = por %p134_p0, %p41_p10  ;;  %s2845_s25 = sshll.u32 %s185_s20, 3 }
  0x1a   : > { %s2846_s26 = sshll.u32 %s3111_s18, 3  ;;  %s189_s30 = scalar_lea.vmem [#allocation2], %s2845_s25 }
  0x1b   : > { %s193_s29 = scalar_lea.hbm %s3553_s0, %s2846_s26  ;;  %s197_s5 = sshll.u32 %s189_s30, 4  ;;  %s198_s5 = int_to_ptr.vmem [resolvable:$true] %s197_s5 }
  0x1c   : > { %s195_s6 = sshll.u32 %s193_s29, 4  ;;  %p3234_p7 = pnand %p2885_p2, %p3207_p11  ;;  %s196_s6 = int_to_ptr.hbm [resolvable:$true] %s195_s6 }
  0x1d   : > { %s186_s8 = scalar_lea.sflag [#allocation3], %s185_s20  ;;  %s3011_s9 = sshra.s32 %s196_s6, 4  ;;  %s3012_s9 = int_to_ptr.hbm [resolvable:$true] %s3011_s9 }
  0x1e   : > { %s3013_s11 = scalar_lea.hbm %s3012_s9, 8  ;;  %p3015_p9 = pneg %p3234_p7 }
  0x1f   : > { %p3014_p8 = scmp.ne.s32.totalorder %s3012_s9, %s3013_s11  ;;  %s3018_s26 = scalar_lea.hbm %s3553_s0, 16 }
  0x20   : > { %p3019_p11 = scmp.lt.s32.totalorder %s3012_s9, %s3553_s0  ;;  %p3020_p0 = scmp.lt.s32.totalorder %s3018_s26, %s3013_s11 }
  0x21   : > { %p3016_p10 = pnand %p3015_p9, %p3014_p8 }
  0x22   : > { %p3021_p2 = por %p3020_p0, %p3019_p11 }
  0x23   : > { %p3017_p13 = pneg %p3016_p10 }
  0x25   : > { %p3022_p5 = pnand %p3021_p2, %p3017_p13 }
  0x27   : > { %3025 = shalt.err (!%p3022_p5)
}
  0x28   : > { %2878 = dma.hbm_to_vmem [thread:$0]  (!%p3234_p7), %s196_s6, 128, %s198_s5, %s186_s8  }
  0x29   : > { %206 = sbr.rel (%p3180_p3) target bundleno = 2666 (0xa6a), region = 36  ;;  %s3251_s20 = sand.u32 (!%p3180_p3), 1, %s3103_s16  }
  0x2a   : > { %s2848_s28 = sshll.u32 (!%p3180_p3), %s3251_s20, 3  ;;  %s209_s29 = scalar_lea.sflag (!%p3180_p3), [#allocation3], %s3251_s20 }
  0x2b   : > { %s3257_s30 = scalar_lea.vmem (!%p3180_p3), [#allocation2], %s2848_s28 }
  0x2e   : > { %3086 = dma.done.wait (%p3213_p12), %s209_s29, 128  }
  0x2f   : > { %3088 = vsyncadd (%p3213_p12), %s209_s29, 4294967168 }
  0x30   : > { %3090 = dma.done.wait (%p42_p1), [#allocation6], 3072  }
  0x31   : > { %3092 = vsyncadd (%p42_p1), [#allocation6], 4294964224  ;;  %v263_v0 = vld [vmem:[#allocation5 + $0x70] sm:$0xff]  ;;  %v261_v1 = vld [vmem:[#allocation5 + $0x60] sm:$0xff]  ;;  %vm273_vm0 = vcmask 523264   ;;  %s3119_s23 = smov 112  }
  0x32   : > { %v259_v2 = vld [vmem:[#allocation5 + $0x50] sm:$0xff]  ;;  %v3267_v3 = vand.u32 4294901760, %v263_v0  ;;  %v3269_v4 = vand.u32 4294901760, %v261_v1  ;;  %v257_v6 = vld [vmem:[#allocation5 + $0x40] sm:$0xff]  ;;  %v264_v55 = vld [vmem:[#allocation5 + $0x78] sm:$0xff]  ;;  %s3120_s19 = smov 64  }
  0x33   : > { %v3271_v5 = vand.u32 4294901760, %v259_v2  ;;  %v255_v7 = vld [vmem:[#allocation5 + $0x30] sm:$0xff]  ;;  %v253_v8 = vld [vmem:[#allocation5 + $0x20] sm:$0xff]  ;;  %v3273_v9 = vand.u32 4294901760, %v257_v6  ;;  %v262_v56 = vld [vmem:[#allocation5 + $0x68] sm:$0xff]  ;;  %v3365_v58 = vand.u32 4294901760, %v264_v55 }
  0x34   : > { %v3275_v10 = vand.u32 4294901760, %v255_v7  ;;  %v3277_v11 = vand.u32 4294901760, %v253_v8  ;;  %v251_v12 = vld [vmem:[#allocation5 + $0x10] sm:$0xff]  ;;  %v249_v13 = vld [vmem:[#allocation5] sm:$0xff]  ;;  %286 = vmatpush.msra.mxu0 %v3267_v3  ;;  %v319_v14 = vsub.f32 %v263_v0, %v3267_v3  ;;  %v3282_v15 = vsub.f32 %v261_v1, %v3269_v4  ;;  %418 = vmatpush.msra.mxu3 %v3267_v3  ;;  %v260_v57 = vld [vmem:[#allocation5 + $0x58] sm:$0xff]  ;;  %s3121_s5 = smov 32  }
  0x35   : > { %v3286_v16 = vsub.f32 %v259_v2, %v3271_v5  ;;  %v3288_v17 = vand.u32 4294901760, %v251_v12  ;;  %v3291_v18 = vsub.f32 %v257_v6, %v3273_v9  ;;  %v3302_v24 = vand.u32 4294901760, %v249_v13  ;;  %v248_v32 = vld [vmem:[%s3257_s30] sm:$0xff]  ;;  %v258_v61 = vld [vmem:[#allocation5 + $0x48] sm:$0xff]  ;;  %s3122_s6 = smov 96   ;;  %s3123_s7 = smov 80  }
  0x36   : > { %v3294_v19 = vsub.f32 %v255_v7, %v3275_v10  ;;  %v3297_v20 = vsub.f32 %v253_v8, %v3277_v11  ;;  %288 = vmatpush.msra.mxu0 %v3269_v4  ;;  %v320_v21 = vand.u32 4294901760, %v319_v14  ;;  %381 = vmatpush.msra.mxu2 %v319_v14  ;;  %v326_v22 = vand.u32 4294901760, %v3282_v15  ;;  %v256_v6 = vld [vmem:[#allocation5 + $0x38] sm:$0xff]  ;;  %s3124_s8 = smov 48   ;;  %s3125_s9 = smov 16  }
  0x37   : > { %v332_v23 = vand.u32 4294901760, %v3286_v16  ;;  %420 = vmatpush.msra.mxu3 %v3269_v4  ;;  %v338_v25 = vand.u32 4294901760, %v3291_v18  ;;  %v3307_v26 = vsub.f32 %v251_v12, %v3288_v17  ;;  %v361_v36 = vsub.f32 %v249_v13, %v3302_v24  ;;  %s2853_s11 = sshll.u32 %s3175_s22, 3  ;;  %s247_s29 = scalar_lea.vmem [#allocation8], %s2848_s28 }
  0x38   : > { %290 = vmatpush.msra.mxu0 %v3271_v5  ;;  %v321_v27 = vsub.f32 %v319_v14, %v320_v21  ;;  %v327_v28 = vsub.f32 %v3282_v15, %v326_v22  ;;  %384 = vmatpush.msra.mxu2 %v3282_v15  ;;  %v344_v30 = vand.u32 4294901760, %v3294_v19  ;;  %v350_v31 = vand.u32 4294901760, %v3297_v20  ;;  %s2746_s26 = scalar_lea.hbm %s3557_s4, %s2853_s11  ;;  %s2748_s30 = sshll.u32 %s247_s29, 4  ;;  %s2749_s30 = int_to_ptr.vmem [resolvable:$true] %s2748_s30 }
  0x39   : > { %v333_v29 = vsub.f32 %v3286_v16, %v332_v23  ;;  %422 = vmatpush.msra.mxu3 %v3271_v5  ;;  %v339_v35 = vsub.f32 %v3291_v18, %v338_v25  ;;  %v356_v39 = vand.u32 4294901760, %v3307_v26  ;;  %v275_v40 = vsel %vm273_vm0, %v248_v32, 0  ;;  %s2736_s22 = scalar_lea.sflag [#allocation4], %s3251_s20  ;;  %s3061_s28 = scalar_lea.hbm %s3557_s4, 16 }
  0x3a   : > { %v322_v33 = vand.u32 4294901760, %v321_v27  ;;  %292 = vmatpush.msra.mxu0 %v3273_v9  ;;  %v328_v34 = vand.u32 4294901760, %v327_v28  ;;  %387 = vmatpush.msra.mxu2 %v3286_v16  ;;  %v345_v38 = vsub.f32 %v3294_v19, %v344_v30  ;;  %v3328_v41 = vand.u32 4294901760, %v275_v40  ;;  %v254_v28 = vld [vmem:[#allocation5 + $0x28] sm:$0xff] }
  0x3b   : > { %424 = vmatpush.msra.mxu3 %v3273_v9  ;;  %v334_v37 = vand.u32 4294901760, %v333_v29  ;;  %v340_v42 = vand.u32 4294901760, %v339_v35  ;;  %v351_v43 = vsub.f32 %v3297_v20, %v350_v31  ;;  %v362_v44 = vand.u32 4294901760, %v361_v36  ;;  %v250_v35 = vld [vmem:[#allocation5 + $0x8] sm:$0xff] }
  0x3c   : > { %323 = vmatpush.msra.mxu1 %v322_v33  ;;  %294 = vmatpush.msra.mxu0 %v3275_v10  ;;  %v3335_v45 = vsub.f32 %v275_v40, %v3328_v41  ;;  %v346_v46 = vand.u32 4294901760, %v345_v38  ;;  %v357_v47 = vsub.f32 %v3307_v26, %v356_v39  ;;  %v3367_v59 = vand.u32 4294901760, %v262_v56 }
  0x3d   : > { %390 = vmatpush.msra.mxu2 %v3291_v18  ;;  %426 = vmatpush.msra.mxu3 %v3275_v10  ;;  %v352_v49 = vand.u32 4294901760, %v351_v43  ;;  %v363_v50 = vsub.f32 %v361_v36, %v362_v44  ;;  %v3369_v60 = vand.u32 4294901760, %v260_v57  ;;  %v3371_v62 = vand.u32 4294901760, %v258_v61 }
  0x3e   : > { %329 = vmatpush.msra.mxu1 %v328_v34  ;;  %296 = vmatpush.msra.mxu0 %v3277_v11  ;;  %v3342_v48 = vand.u32 4294901760, %v3335_v45  ;;  %v358_v52 = vand.u32 4294901760, %v357_v47  ;;  %v3375_v63 = vsub.f32 %v264_v55, %v3365_v58  ;;  %v3378_v0 = vsub.f32 %v262_v56, %v3367_v59 }
  0x3f   : > { %393 = vmatpush.msra.mxu2 %v3294_v19  ;;  %428 = vmatpush.msra.mxu3 %v3277_v11  ;;  %v364_v54 = vand.u32 4294901760, %v363_v50  ;;  %v3381_v1 = vsub.f32 %v260_v57, %v3369_v60  ;;  %v3385_v2 = vsub.f32 %v258_v61, %v3371_v62  ;;  %v3407_v13 = vand.u32 4294901760, %v256_v6 }
  0x40   : > { %335 = vmatpush.msra.mxu1 %v334_v37  ;;  %298 = vmatpush.msra.mxu0 %v3288_v17  ;;  %v304_v51 = vsub.f32 %v3335_v45, %v3342_v48  ;;  %v532_v29 = vand.u32 4294901760, %v254_v28  ;;  %v536_v38 = vand.u32 4294901760, %v250_v35  ;;  %vm759_vm1 = vcmask 130048  }
  0x41   : > { %396 = vmatpush.msra.mxu2 %v3297_v20  ;;  %430 = vmatpush.msra.mxu3 %v3288_v17  ;;  %v575_v7 = vand.u32 4294901760, %v3385_v2  ;;  %vm911_vm3 = vcmask 64512  }
  0x42   : > { %341 = vmatpush.msra.mxu1 %v340_v42  ;;  %300 = vmatpush.msra.mxu0 %v3302_v24  ;;  %v3349_v53 = vand.u32 4294901760, %v304_v51  ;;  %v586_v34 = vsub.f32 %v254_v28, %v532_v29 }
  0x43   : > { %399 = vmatpush.msra.mxu2 %v3307_v26  ;;  %432 = vmatpush.msra.mxu3 %v3302_v24  ;;  %v576_v14 = vsub.f32 %v3385_v2, %v575_v7 }
  0x44   : > { %451 = vmatpush.msrb.mxu0 %v320_v21  ;;  %347 = vmatpush.msra.mxu1 %v346_v46  ;;  %v587_v37 = vand.u32 4294901760, %v586_v34 }
  0x45   : > { %402 = vmatpush.msra.mxu2 %v361_v36  ;;  %436 = vmatmul.f32.vlgmr.msra.gmra.mxu3 %v3342_v48  ;;  %v577_v16 = vand.u32 4294901760, %v576_v14 }
  0x46   : > { %455 = vmatpush.msrb.mxu0 %v326_v22  ;;  %353 = vmatpush.msra.mxu1 %v352_v49  ;;  %v588_v42 = vsub.f32 %v586_v34, %v587_v37 }
  0x47   : > { %405 = vmatmul.f32.vlgmr.msra.gmra.mxu2 %v3335_v45  ;;  %306 = vmatmul.f32.vlgmr.msra.gmra.mxu0 %v3349_v53 }
  0x48   : > { %459 = vmatpush.msrb.mxu0 %v332_v23  ;;  %359 = vmatpush.msra.mxu1 %v358_v52  ;;  %v589_v46 = vand.u32 4294901760, %v588_v42 }
  0x49   : > { %523 = vmatpush.msrb.mxu2 %v3365_v58 }
  0x4a   : > { %463 = vmatpush.msrb.mxu0 %v338_v25  ;;  %365 = vmatpush.msra.mxu1 %v364_v54 }
  0x4b   : > { %367 = vmatmul.f32.vlgmr.msra.gmra.mxu1 %v3328_v41  ;;  %525 = vmatpush.msrb.mxu2 %v3367_v59 }
  0x4c   : > { %494 = vmatpush.msrb.mxu1 %v3267_v3  ;;  %467 = vmatpush.msrb.mxu0 %v344_v30  ;;  %v557_v3 = vand.u32 4294901760, %v3375_v63  ;;  %v580_v30 = vsub.f32 %v256_v6, %v3407_v13 }
  0x4d   : > { %527 = vmatpush.msrb.mxu2 %v3369_v60 }
  0x4e   : > { %496 = vmatpush.msrb.mxu1 %v3269_v4  ;;  %471 = vmatpush.msrb.mxu0 %v350_v31  ;;  %v563_v4 = vand.u32 4294901760, %v3378_v0  ;;  %v558_v8 = vsub.f32 %v3375_v63, %v557_v3  ;;  %v252_v31 = vld [vmem:[#allocation5 + $0x18] sm:$0xff]  ;;  %v581_v32 = vand.u32 4294901760, %v580_v30 }
  0x4f   : > { %529 = vmatpush.msrb.mxu2 %v3371_v62  ;;  %v534_v33 = vand.u32 4294901760, %v252_v31 }
  0x50   : > { %498 = vmatpush.msrb.mxu1 %v3271_v5  ;;  %475 = vmatpush.msrb.mxu0 %v356_v39  ;;  %v569_v5 = vand.u32 4294901760, %v3381_v1  ;;  %v582_v36 = vsub.f32 %v580_v30, %v581_v32 }
  0x51   : > { %531 = vmatpush.msrb.mxu2 %v3407_v13  ;;  %v592_v39 = vsub.f32 %v252_v31, %v534_v33 }
  0x52   : > { %500 = vmatpush.msrb.mxu1 %v3273_v9  ;;  %479 = vmatpush.msrb.mxu0 %v362_v44  ;;  %v564_v9 = vsub.f32 %v3378_v0, %v563_v4  ;;  %v583_v40 = vand.u32 4294901760, %v582_v36  ;;  %v598_v44 = vsub.f32 %v250_v35, %v536_v38 }
  0x53   : > { %481 = vmatmul.f32.vlgmr.msrb.gmra.mxu0 %v3328_v41  ;;  %533 = vmatpush.msrb.mxu2 %v532_v29  ;;  %v593_v43 = vand.u32 4294901760, %v592_v39 }
  0x54   : > { %502 = vmatpush.msrb.mxu1 %v3275_v10  ;;  %618 = vmatpush.msra.mxu0 %v3375_v63  ;;  %v570_v10 = vsub.f32 %v3381_v1, %v569_v5  ;;  %v565_v12 = vand.u32 4294901760, %v564_v9  ;;  %v599_v49 = vand.u32 4294901760, %v598_v44 }
  0x55   : > { %535 = vmatpush.msrb.mxu2 %v534_v33  ;;  %v594_v47 = vsub.f32 %v592_v39, %v593_v43 }
  0x56   : > { %504 = vmatpush.msrb.mxu1 %v3277_v11  ;;  %621 = vmatpush.msra.mxu0 %v3378_v0  ;;  %v559_v11 = vand.u32 4294901760, %v558_v8  ;;  %v571_v15 = vand.u32 4294901760, %v570_v10  ;;  %v600_v51 = vsub.f32 %v598_v44, %v599_v49 }
  0x57   : > { %537 = vmatpush.msrb.mxu2 %v536_v38  ;;  %v595_v50 = vand.u32 4294901760, %v594_v47 }
  0x58   : > { %506 = vmatpush.msrb.mxu1 %v3288_v17  ;;  %624 = vmatpush.msra.mxu0 %v3381_v1  ;;  %v601_v52 = vand.u32 4294901760, %v600_v51 }
  0x59   : > { %560 = vmatpush.msrb.mxu3 %v559_v11  ;;  %688 = vmatpush.msra.mxu2 %v557_v3 }
  0x5a   : > { %508 = vmatpush.msrb.mxu1 %v3302_v24  ;;  %627 = vmatpush.msra.mxu0 %v3385_v2 }
  0x5b   : > { %510 = vmatmul.f32.vlgmr.msrb.gmra.mxu1 %v3328_v41  ;;  %566 = vmatpush.msrb.mxu3 %v565_v12 }
  0x5c   : > { %655 = vmatpush.msra.mxu1 %v3365_v58  ;;  %630 = vmatpush.msra.mxu0 %v580_v30 }
  0x5d   : > { %572 = vmatpush.msrb.mxu3 %v571_v15  ;;  %543 = vmatmul.f32.vlgmr.msrb.gmra.mxu2 %v3349_v53 }
  0x5e   : > { %657 = vmatpush.msra.mxu1 %v3367_v59  ;;  %633 = vmatpush.msra.mxu0 %v586_v34 }
  0x5f   : > { %578 = vmatpush.msrb.mxu3 %v577_v16  ;;  %692 = vmatpush.msra.mxu2 %v563_v4 }
  0x60   : > { %659 = vmatpush.msra.mxu1 %v3369_v60  ;;  %636 = vmatpush.msra.mxu0 %v592_v39 }
  0x61   : > { %584 = vmatpush.msrb.mxu3 %v583_v40  ;;  %696 = vmatpush.msra.mxu2 %v569_v5 }
  0x62   : > { %661 = vmatpush.msra.mxu1 %v3371_v62  ;;  %639 = vmatpush.msra.mxu0 %v598_v44 }
  0x63   : > { %590 = vmatpush.msrb.mxu3 %v589_v46  ;;  %642 = vmatmul.f32.vlgmr.msra.gmra.mxu0 %v3335_v45 }
  0x64   : > { %663 = vmatpush.msra.mxu1 %v3407_v13  ;;  %700 = vmatpush.msra.mxu2 %v575_v7 }
  0x65   : > { %596 = vmatpush.msrb.mxu3 %v595_v50 }
  0x66   : > { %665 = vmatpush.msra.mxu1 %v532_v29  ;;  %704 = vmatpush.msra.mxu2 %v581_v32 }
  0x67   : > { %602 = vmatpush.msrb.mxu3 %v601_v52 }
  0x68   : > { %667 = vmatpush.msra.mxu1 %v534_v33  ;;  %604 = vmatmul.f32.vlgmr.msrb.gmra.mxu3 %v3328_v41 }
  0x69   : > { %731 = vmatpush.msra.mxu3 %v3365_v58  ;;  %708 = vmatpush.msra.mxu2 %v587_v37 }
  0x6a   : > { %669 = vmatpush.msra.mxu1 %v536_v38 }
  0x6b   : > { %673 = vmatmul.f32.vlgmr.msra.gmra.mxu1 %v3342_v48  ;;  %733 = vmatpush.msra.mxu3 %v3367_v59 }
  0x6c   : > { %712 = vmatpush.msra.mxu2 %v593_v43 }
  0x6d   : > { %735 = vmatpush.msra.mxu3 %v3369_v60 }
  0x6e   : > { %716 = vmatpush.msra.mxu2 %v599_v49 }
  0x6f   : > { %737 = vmatpush.msra.mxu3 %v3371_v62  ;;  %718 = vmatmul.f32.vlgmr.msra.gmra.mxu2 %v3328_v41 }
  0x71   : > { %739 = vmatpush.msra.mxu3 %v3407_v13 }
  0x73   : > { %741 = vmatpush.msra.mxu3 %v532_v29 }
  0x75   : > { %743 = vmatpush.msra.mxu3 %v534_v33 }
  0x77   : > { %745 = vmatpush.msra.mxu3 %v536_v38 }
  0x78   : > { %747 = vmatmul.f32.vlgmr.msra.gmra.mxu3 %v3328_v41 }
  0xc4   : > { %v307_v17 = vpop.f32.mrf.mxu0 }
  0xc8   : > { %v368_v18 = vpop.f32.mrf.mxu1  ;;  %v437_v22 = vpop.f32.mrf.mxu3 }
  0xc9   : > { %v369_v19 = vadd.f32 %v368_v18, %v307_v17  ;;  %v751_v17 = vlaneseq }
  0xca   : > { %v406_v20 = vpop.f32.mrf.mxu2 }
  0xcb   : > { %v407_v21 = vadd.f32 %v406_v20, %v369_v19 }
  0xcd   : > { %v438_v23 = vadd.f32 %v437_v22, %v407_v21  ;;  %v3449_v22 = vshrl.u32 %v751_v17, 7 }
  0xd0   : > { %v482_v24 = vpop.f32.mrf.mxu0 }
  0xd1   : > { %v483_v25 = vadd.f32 %v482_v24, %v438_v23  ;;  %v3451_v23 = vand.u32 127, %v751_v17 }
  0xd3   : > { %vm755_vm2 = vcmp.le.s32.totalorder %v3451_v23, %v3449_v22 }
  0xd8   : > { %v511_v26 = vpop.f32.mrf.mxu1 }
  0xd9   : > { %v3417_v27 = vadd.f32 %v511_v26, %v483_v25 }
  0xdb   : > { %1085 = vrot.lane.b32.xlu2 %v3417_v27, %s3119_s23  ;;  %757 = vrot.lane.b32.xlu0 %v3417_v27, %s3120_s19  ;;  %v760_v45 = vsel %vm759_vm1, %v3417_v27, 0 }
  0xdc   : > { %v781_v48 = vand.u32 4294901760, %v760_v45 }
  0xde   : > { %v782_v53 = vsub.f32 %v760_v45, %v781_v48 }
  0xe0   : > { %v783_v54 = vand.u32 4294901760, %v782_v53  ;;  %v544_v63 = vpop.f32.mrf.mxu2  ;;  %v643_v1 = vpop.f32.mrf.mxu0 }
  0xe2   : > { %v784_v57 = vsub.f32 %v782_v53, %v783_v54 }
  0xe4   : > { %v785_v60 = vand.u32 4294901760, %v784_v57 }
  0xe8   : > { %v674_v4 = vpop.f32.mrf.mxu1 }
  0xeb   : > { %v605_v0 = vpop.f32.mrf.mxu3 }
  0xec   : > { %v606_v2 = vadd.f32 %v605_v0, %v544_v63 }
  0xee   : > { %v644_v3 = vadd.f32 %v643_v1, %v606_v2 }
  0xf0   : > { %v675_v5 = vadd.f32 %v674_v4, %v644_v3 }
  0xf2   : > { %v719_v6 = vpop.f32.mrf.mxu2 }
  0xf3   : > { %v720_v7 = vadd.f32 %v719_v6, %v675_v5 }
  0xfb   : > { %v748_v8 = vpop.f32.mrf.mxu3 }
  0xfc   : > { %v3445_v9 = vadd.f32 %v748_v8, %v720_v7 }
  0xfe   : > { %v954_v10 = vand.u32 4294901760, %v3445_v9 }
 0x100   : > { %v981_v11 = vsub.f32 %v3445_v9, %v954_v10 }
 0x102   : > { %v982_v12 = vand.u32 4294901760, %v981_v11 }
 0x104   : > { %v983_v13 = vsub.f32 %v981_v11, %v982_v12 }
 0x106   : > { %v984_v14 = vand.u32 4294901760, %v983_v13 }
 0x135   : > { %v1086_v40 = vpop.permute.xlu2 %1085 }
 0x136   : > { %v1089_v44 = vsel %vm759_vm1, %v1086_v40, 0 }
 0x137   : > { %v1110_v50 = vand.u32 4294901760, %v1089_v44 }
 0x14d   : > { %v758_v55 = vpop.permute.xlu0 %757 }
 0x14e   : > { %v762_v56 = vsel %vm759_vm1, %v758_v55, 0 }
 0x14f   : > { %v779_v58 = vand.u32 4294901760, %v762_v56 }
 0x151   : > { %v806_v59 = vsub.f32 %v762_v56, %v779_v58  ;;  %780 = vmatpush.xpose.msrb.mxu0 %v779_v58  ;;  %856 = vmatpush.xpose.msrb.mxu3 %v779_v58 }
 0x153   : > { %v807_v61 = vand.u32 4294901760, %v806_v59  ;;  %833 = vmatpush.xpose.msrb.mxu2 %v806_v59 }
 0x154   : > { %786 = vmatmul.f32.vlgmr.msrb.gmra.mxu0 %v785_v60  ;;  %860 = vmatmul.f32.vlgmr.msrb.gmra.mxu3 %v783_v54 }
 0x155   : > { %v808_v41 = vsub.f32 %v806_v59, %v807_v61  ;;  %882 = vmatpush.xpose.msra.mxu0 %v807_v61  ;;  %985 = vmatpush.msra.mxu3 %v984_v14 }
 0x156   : > { %836 = vmatmul.f32.vlgmr.msrb.gmra.mxu2 %v782_v53  ;;  %v1111_v53 = vsub.f32 %v1089_v44, %v1110_v50 }
 0x157   : > { %v809_v62 = vand.u32 4294901760, %v808_v41  ;;  %955 = vmatpush.msra.mxu2 %v954_v10  ;;  %1079 = vmatpush.msrb.mxu3 %v954_v10 }
 0x158   : > { %v1112_v56 = vand.u32 4294901760, %v1111_v53 }
 0x159   : > { %810 = vmatpush.xpose.msrb.mxu1 %v809_v62  ;;  %1008 = vmatpush.msrb.mxu0 %v981_v11 }
 0x15a   : > { %1057 = vmatpush.msrb.mxu2 %v982_v12  ;;  %v1113_v41 = vsub.f32 %v1111_v53, %v1112_v56 }
 0x15c   : > { %812 = vmatmul.f32.vlgmr.msrb.gmra.mxu1 %v781_v48  ;;  %884 = vmatmul.f32.vlgmr.msra.gmra.mxu0 %v781_v48  ;;  %v1114_v2 = vand.u32 4294901760, %v1113_v41 }
 0x15d   : > { %904 = vmatpush.xpose.msra.mxu1 %v779_v58 }
 0x161   : > { %1031 = vmatpush.msrb.mxu1 %v954_v10 }
 0x164   : > { %906 = vmatmul.f32.vlgmr.msra.gmra.mxu1 %v781_v48 }
 0x1d1   : > { %v787_v15 = vpop.f32.mrf.mxu0 }
 0x1d7   : > { %v861_v21 = vpop.f32.mrf.mxu3 }
 0x1d9   : > { %v813_v16 = vpop.f32.mrf.mxu1  ;;  %v837_v19 = vpop.f32.mrf.mxu2 }
 0x1da   : > { %v814_v18 = vadd.f32 %v813_v16, %v787_v15  ;;  %v885_v25 = vpop.f32.mrf.mxu0 }
 0x1dc   : > { %v838_v20 = vadd.f32 %v837_v19, %v814_v18 }
 0x1de   : > { %v862_v24 = vadd.f32 %v861_v21, %v838_v20 }
 0x1e0   : > { %v886_v26 = vadd.f32 %v885_v25, %v862_v24 }
 0x1e1   : > { %v907_v28 = vpop.f32.mrf.mxu1 }
 0x1e2   : > { %v908_v29 = vadd.f32 %v907_v28, %v886_v26 }
 0x1e4   : > { %v910_v30 = vsel %vm755_vm2, %v908_v29, -1e+30 }
 0x1e5   : > { %v912_v31 = vsel %vm911_vm3, %v910_v30, -inf }
 0x1e6   : > { %913 = vmax.xlane.f32.xlu0 %v912_v31 }
 0x1fa   : > { %1743 = vrot.lane.b32.xlu0 %v3417_v27, %s3121_s5 }
 0x202   : > { %1741 = vrot.lane.b32.xlu0 %v3417_v27, %s3122_s6 }
 0x20a   : > { %1920 = vrot.lane.b32.xlu0 %v3445_v9, %s3122_s6 }
 0x212   : > { %2235 = vrot.lane.b32.xlu0 %v3417_v27, %s3123_s7 }
 0x259   : > { %v914_v32 = vpop.xlane.xlu0 %913 }
 0x25a   : > { %v915_v33 = vsub.f32 %v910_v30, %v914_v32 }
 0x25c   : > { %v916_v34 = vmul.f32 1.442695, %v915_v33 }
 0x25e   : > { %2935 = vpow2.f32 %v916_v34 }
 0x264   : > { %v2936_v35 = vpop.eup %2935 }
 0x265   : > { %v918_v36 = vsel %vm911_vm3, %v2936_v35, 0.0 }
 0x266   : > { %919 = vadd.xlane.f32.xlu1 %v918_v36 }
 0x27f   : > { %1087 = vrot.lane.b32.xlu1 %v3417_v27, %s3124_s8 }
 0x2d9   : > { %v920_v37 = vpop.xlane.xlu1 %919 }
 0x2da   : > { %2937 = vrcp.f32 %v920_v37  ;;  %v932_v43 = vand.u32 2147483648, %v920_v37  ;;  %v930_v47 = vand.u32 2147483647, %v920_v37  ;;  %vm926_vm5 = vweird.f32 %v920_v37 }
 0x2dc   : > { %v933_v51 = vor.u32 1.1754944e-38, %v932_v43  ;;  %vm931_vm7 = vcmp.eq.f32.partialorder %v930_v47, 8.507059e+37 }
 0x2e0   : > { %v2938_v38 = vpop.eup %2937 }
 0x2e1   : > { %v922_v39 = vmul.f32 %v2938_v38, %v920_v37  ;;  %vm927_vm4 = vweird.f32 %v2938_v38 }
 0x2e2   : > { %vm928_vm6 = vmor %vm926_vm5, %vm927_vm4 }
 0x2e3   : > { %v923_v42 = vsub.f32 1.0, %v922_v39 }
 0x2e5   : > { %v924_v46 = vmul.f32 %v2938_v38, %v923_v42 }
 0x2e7   : > { %v925_v49 = vadd.f32 %v2938_v38, %v924_v46 }
 0x2e9   : > { %v929_v52 = vsel %vm928_vm6, %v2938_v38, %v925_v49 }
 0x2ea   : > { %v934_v45 = vsel %vm931_vm7, %v933_v51, %v929_v52 }
 0x2eb   : > { %v935_v48 = vmul.f32 %v2936_v35, %v934_v45 }
 0x2ed   : > { %v937_v54 = vsel %vm911_vm3, %v935_v48, 0 }
 0x2ee   : > { %v956_v55 = vand.u32 4294901760, %v937_v54 }
 0x2f0   : > { %987 = vmatmul.f32.vlgmr.msra.gmra.mxu3 %v956_v55  ;;  %v957_v57 = vsub.f32 %v937_v54, %v956_v55 }
 0x2f1   : > { %v1088_v58 = vpop.permute.xlu1 %1087 }
 0x2f2   : > { %v1091_v59 = vsel %vm759_vm1, %v1088_v58, 0  ;;  %1011 = vmatmul.f32.vlgmr.msrb.gmra.mxu0 %v957_v57  ;;  %v958_v60 = vand.u32 4294901760, %v957_v57 }
 0x2f3   : > { %v1108_v61 = vand.u32 4294901760, %v1091_v59 }
 0x2f4   : > { %1035 = vmatmul.f32.vlgmr.msrb.gmra.mxu1 %v958_v60  ;;  %v959_v62 = vsub.f32 %v957_v57, %v958_v60 }
 0x2f5   : > { %v1135_v63 = vsub.f32 %v1091_v59, %v1108_v61  ;;  %1109 = vmatpush.xpose.msra.mxu0 %v1108_v61  ;;  %1185 = vmatpush.xpose.msra.mxu3 %v1108_v61 }
 0x2f6   : > { %v960_v0 = vand.u32 4294901760, %v959_v62  ;;  %v268_v62 = vld [vmem:[#allocation7 + $0x18] sm:$0xff] }
 0x2f7   : > { %v1136_v1 = vand.u32 4294901760, %v1135_v63 }
 0x2f8   : > { %961 = vmatmul.f32.vlgmr.msra.gmra.mxu2 %v960_v0  ;;  %1081 = vmatmul.f32.vlgmr.msrb.gmra.mxu3 %v956_v55  ;;  %v267_v0 = vld [vmem:[#allocation7 + $0x10] sm:$0xff] }
 0x2f9   : > { %v1137_v3 = vsub.f32 %v1135_v63, %v1136_v1  ;;  %1162 = vmatpush.xpose.msra.mxu2 %v1135_v63  ;;  %1211 = vmatpush.xpose.msrb.mxu0 %v1136_v1  ;;  %v1434_v63 = vand.u32 4294901760, %v268_v62 }
 0x2fa   : > { %1115 = vmatmul.f32.vlgmr.msra.gmra.mxu0 %v1114_v2  ;;  %v1436_v2 = vand.u32 4294901760, %v267_v0 }
 0x2fb   : > { %v1138_v4 = vand.u32 4294901760, %v1137_v3  ;;  %v1462_v1 = vsub.f32 %v268_v62, %v1434_v63 }
 0x2fd   : > { %1139 = vmatpush.xpose.msra.mxu1 %v1138_v4  ;;  %v1463_v3 = vand.u32 4294901760, %v1462_v1  ;;  %v1468_v4 = vsub.f32 %v267_v0, %v1436_v2 }
 0x300   : > { %1059 = vmatmul.f32.vlgmr.msrb.gmra.mxu2 %v956_v55  ;;  %1141 = vmatmul.f32.vlgmr.msra.gmra.mxu1 %v1110_v50 }
 0x301   : > { %1233 = vmatpush.xpose.msrb.mxu1 %v1108_v61  ;;  %1189 = vmatmul.f32.vlgmr.msra.gmra.mxu3 %v1112_v56 }
 0x302   : > { %1213 = vmatmul.f32.vlgmr.msrb.gmra.mxu0 %v1110_v50 }
 0x308   : > { %1165 = vmatmul.f32.vlgmr.msra.gmra.mxu2 %v1111_v53  ;;  %1235 = vmatmul.f32.vlgmr.msrb.gmra.mxu1 %v1110_v50 }
 0x36f   : > { %v1012_v6 = vpop.f32.mrf.mxu0 }
 0x371   : > { %v1036_v11 = vpop.f32.mrf.mxu1 }
 0x373   : > { %v988_v5 = vpop.f32.mrf.mxu3 }
 0x377   : > { %v1116_v16 = vpop.f32.mrf.mxu0 }
 0x37b   : > { %v962_v7 = vpop.f32.mrf.mxu2  ;;  %v1082_v13 = vpop.f32.mrf.mxu3 }
 0x37c   : > { %v989_v8 = vadd.f32 %v988_v5, %v962_v7  ;;  %v1464_v5 = vsub.f32 %v1462_v1, %v1463_v3 }
 0x37d   : > { %v1142_v18 = vpop.f32.mrf.mxu1 }
 0x37e   : > { %v1013_v10 = vadd.f32 %v1012_v6, %v989_v8  ;;  %v1143_v19 = vadd.f32 %v1142_v18, %v1116_v16  ;;  %v1469_v6 = vand.u32 4294901760, %v1468_v4  ;;  %v1465_v7 = vand.u32 4294901760, %v1464_v5 }
 0x37f   : > { %v1214_v26 = vpop.f32.mrf.mxu0 }
 0x380   : > { %v1037_v12 = vadd.f32 %v1036_v11, %v1013_v10  ;;  %v1470_v8 = vsub.f32 %v1468_v4, %v1469_v6  ;;  %v266_v10 = vld [vmem:[#allocation7 + $0x8] sm:$0xff] }
 0x381   : > { %v1596_v11 = vand.u32 4294901760, %v266_v10 }
 0x383   : > { %v1060_v14 = vpop.f32.mrf.mxu2 }
 0x384   : > { %v1061_v15 = vadd.f32 %v1060_v14, %v1037_v12  ;;  %v1190_v24 = vpop.f32.mrf.mxu3  ;;  %v1471_v12 = vand.u32 4294901760, %v1470_v8  ;;  %v1624_v14 = vsub.f32 %v266_v10, %v1596_v11 }
 0x385   : > { %v1236_v29 = vpop.f32.mrf.mxu1 }
 0x386   : > { %v3469_v17 = vadd.f32 %v1082_v13, %v1061_v15  ;;  %v265_v13 = vld [vmem:[#allocation7] sm:$0xff]  ;;  %v1625_v16 = vand.u32 4294901760, %v1624_v14 }
 0x387   : > { %v1598_v15 = vand.u32 4294901760, %v265_v13 }
 0x389   : > { %v1630_v18 = vsub.f32 %v265_v13, %v1598_v15 }
 0x38b   : > { %v1166_v20 = vpop.f32.mrf.mxu2 }
 0x38c   : > { %v1167_v21 = vadd.f32 %v1166_v20, %v1143_v19  ;;  %v1626_v19 = vsub.f32 %v1624_v14, %v1625_v16  ;;  %v1631_v20 = vand.u32 4294901760, %v1630_v18 }
 0x38e   : > { %v1191_v25 = vadd.f32 %v1190_v24, %v1167_v21  ;;  %v1627_v21 = vand.u32 4294901760, %v1626_v19  ;;  %v1632_v24 = vsub.f32 %v1630_v18, %v1631_v20 }
 0x390   : > { %v1215_v28 = vadd.f32 %v1214_v26, %v1191_v25  ;;  %v1633_v25 = vand.u32 4294901760, %v1632_v24  ;;  %v1744_v26 = vpop.permute.xlu0 %1743 }
 0x392   : > { %v1237_v30 = vadd.f32 %v1236_v29, %v1215_v28 }
 0x394   : > { %v1239_v31 = vsel %vm755_vm2, %v1237_v30, -1e+30 }
 0x395   : > { %v1240_v32 = vsel %vm911_vm3, %v1239_v31, -inf }
 0x396   : > { %1241 = vmax.xlane.f32.xlu2 %v1240_v32 }
 0x3ae   : > { %1265 = vrot.lane.b32.xlu2 %v3445_v9, %s3119_s23  ;;  %s2750_s23 = sshll.u32 %s2746_s26, 4  ;;  %s2751_s23 = int_to_ptr.hbm [resolvable:$true] %s2750_s23 }
 0x3af   : > { %s3055_s19 = sshra.s32 %s2751_s23, 4  ;;  %s3056_s19 = int_to_ptr.hbm [resolvable:$true] %s3055_s19 }
 0x3b0   : > { %s3057_s5 = scalar_lea.hbm %s3056_s19, 8  ;;  %p3062_p12 = scmp.lt.s32.totalorder %s3056_s19, %s3557_s4 }
 0x3b1   : > { %p3058_p1 = scmp.ne.s32.totalorder %s3056_s19, %s3057_s5  ;;  %p3063_p7 = scmp.lt.s32.totalorder %s3061_s28, %s3057_s5 }
 0x3b3   : > { %p3059_p3 = pnand %p3058_p1, %p3220_p4  ;;  %p3064_p8 = por %p3063_p7, %p3062_p12 }
 0x3b5   : > { %p3060_p5 = pneg %p3059_p3 }
 0x3b7   : > { %p3065_p9 = pnand %p3064_p8, %p3060_p5 }
 0x409   : > { %v1242_v33 = vpop.xlane.xlu2 %1241 }
 0x40a   : > { %v1243_v34 = vsub.f32 %v1239_v31, %v1242_v33  ;;  %v1747_v33 = vsel %vm759_vm1, %v1744_v26, 0 }
 0x40c   : > { %v1244_v35 = vmul.f32 1.442695, %v1243_v34  ;;  %v1580_v34 = vsel %vm759_vm1, %v3469_v17, 0 }
 0x40e   : > { %2939 = vpow2.f32 %v1244_v35  ;;  %v1742_v35 = vpop.permute.xlu0 %1741 }
 0x411   : > { %v1266_v36 = vpop.permute.xlu2 %1265 }
 0x412   : > { %v1286_v37 = vand.u32 4294901760, %v1266_v36 }
 0x414   : > { %v2940_v38 = vpop.eup %2939  ;;  %v1313_v39 = vsub.f32 %v1266_v36, %v1286_v37  ;;  %1287 = vmatpush.msrb.mxu2 %v1286_v37  ;;  %1363 = vmatpush.msra.mxu1 %v1286_v37 }
 0x415   : > { %v1246_v40 = vsel %vm911_vm3, %v2940_v38, 0.0 }
 0x416   : > { %v1314_v42 = vand.u32 4294901760, %v1313_v39  ;;  %1247 = vadd.xlane.f32.xlu1 %v1246_v40  ;;  %1340 = vmatpush.msra.mxu0 %v1313_v39 }
 0x417   : > { %1466 = vmatpush.msrb.mxu1 %v1465_v7 }
 0x418   : > { %v1315_v43 = vsub.f32 %v1313_v39, %v1314_v42  ;;  %1389 = vmatpush.msra.mxu2 %v1314_v42  ;;  %1435 = vmatpush.msrb.mxu0 %v1434_v63  ;;  %v1600_v39 = vand.u32 4294901760, %v1580_v34 }
 0x419   : > { %1472 = vmatpush.msrb.mxu1 %v1471_v12 }
 0x41a   : > { %v1316_v44 = vand.u32 4294901760, %v1315_v43  ;;  %1437 = vmatpush.msrb.mxu0 %v1436_v2 }
 0x41c   : > { %1317 = vmatpush.msrb.mxu3 %v1316_v44 }
 0x41e   : > { %1411 = vmatpush.msra.mxu3 %v1286_v37  ;;  %v1764_v37 = vand.u32 4294901760, %v1747_v33 }
 0x420   : > { %v1791_v44 = vsub.f32 %v1747_v33, %v1764_v37 }
 0x489   : > { %v1248_v46 = vpop.xlane.xlu1 %1247 }
 0x48a   : > { %2941 = vrcp.f32 %v1248_v46  ;;  %v1260_v51 = vand.u32 2147483648, %v1248_v46  ;;  %v1258_v45 = vand.u32 2147483647, %v1248_v46  ;;  %vm1254_vm9 = vweird.f32 %v1248_v46 }
 0x48c   : > { %v1261_v53 = vor.u32 1.1754944e-38, %v1260_v51  ;;  %vm1259_vm11 = vcmp.eq.f32.partialorder %v1258_v45, 8.507059e+37  ;;  %v1792_v51 = vand.u32 4294901760, %v1791_v44 }
 0x490   : > { %v2942_v47 = vpop.eup %2941 }
 0x491   : > { %v1250_v49 = vmul.f32 %v2942_v47, %v1248_v46  ;;  %vm1255_vm8 = vweird.f32 %v2942_v47 }
 0x492   : > { %vm1256_vm10 = vmor %vm1254_vm9, %vm1255_vm8 }
 0x493   : > { %v1251_v50 = vsub.f32 1.0, %v1250_v49 }
 0x495   : > { %v1252_v52 = vmul.f32 %v2942_v47, %v1251_v50 }
 0x497   : > { %v1253_v48 = vadd.f32 %v2942_v47, %v1252_v52  ;;  %v1921_v52 = vpop.permute.xlu0 %1920 }
 0x499   : > { %v1257_v54 = vsel %vm1256_vm10, %v2942_v47, %v1253_v48  ;;  %v1601_v47 = vsub.f32 %v1580_v34, %v1600_v39 }
 0x49a   : > { %v1262_v55 = vsel %vm1259_vm11, %v1261_v53, %v1257_v54  ;;  %v1793_v53 = vsub.f32 %v1791_v44, %v1792_v51  ;;  %v1941_v54 = vand.u32 4294901760, %v1921_v52 }
 0x49b   : > { %v1263_v56 = vmul.f32 %v2940_v38, %v1262_v55  ;;  %v1602_v48 = vand.u32 4294901760, %v1601_v47 }
 0x49d   : > { %v1269_v57 = vsel %vm911_vm3, %v1263_v56, 0  ;;  %v1603_v56 = vsub.f32 %v1601_v47, %v1602_v48 }
 0x49e   : > { %v1288_v58 = vand.u32 4294901760, %v1269_v57 }
 0x4a0   : > { %1319 = vmatmul.f32.vlgmr.msrb.gmra.mxu3 %v1288_v58  ;;  %v1289_v59 = vsub.f32 %v1269_v57, %v1288_v58 }
 0x4a1   : > { %1519 = vmatpush.msrb.mxu3 %v1434_v63 }
 0x4a2   : > { %1343 = vmatmul.f32.vlgmr.msra.gmra.mxu0 %v1289_v59  ;;  %v1290_v60 = vand.u32 4294901760, %v1289_v59 }
 0x4a3   : > { %1521 = vmatpush.msrb.mxu3 %v1436_v2  ;;  %1546 = vmatpush.msra.mxu0 %v1463_v3 }
 0x4a4   : > { %1367 = vmatmul.f32.vlgmr.msra.gmra.mxu1 %v1290_v60  ;;  %v1291_v61 = vsub.f32 %v1289_v59, %v1290_v60  ;;  %v1968_v59 = vsub.f32 %v1921_v52, %v1941_v54  ;;  %v1604_v60 = vand.u32 4294901760, %v1603_v56 }
 0x4a5   : > { %1550 = vmatpush.msra.mxu0 %v1469_v6  ;;  %1571 = vmatpush.msra.mxu1 %v1434_v63 }
 0x4a6   : > { %v1292_v41 = vand.u32 4294901760, %v1291_v61  ;;  %v1745_v61 = vsel %vm759_vm1, %v1742_v35, 0 }
 0x4a7   : > { %1573 = vmatpush.msra.mxu1 %v1436_v2  ;;  %v1766_v62 = vand.u32 4294901760, %v1745_v61 }
 0x4a8   : > { %1293 = vmatmul.f32.vlgmr.msrb.gmra.mxu2 %v1292_v41  ;;  %1413 = vmatmul.f32.vlgmr.msra.gmra.mxu3 %v1288_v58  ;;  %v1969_v41 = vand.u32 4294901760, %v1968_v59 }
 0x4a9   : > { %1494 = vmatpush.msrb.mxu2 %v1462_v1  ;;  %1628 = vmatpush.msra.mxu3 %v1627_v21  ;;  %v1767_v0 = vsub.f32 %v1745_v61, %v1766_v62 }
 0x4aa   : > { %v1970_v63 = vsub.f32 %v1968_v59, %v1969_v41 }
 0x4ab   : > { %1497 = vmatpush.msrb.mxu2 %v1468_v4  ;;  %1634 = vmatpush.msra.mxu3 %v1633_v25  ;;  %v1768_v2 = vand.u32 4294901760, %v1767_v0 }
 0x4ac   : > { %v1971_v1 = vand.u32 4294901760, %v1970_v63 }
 0x4ad   : > { %v1769_v3 = vsub.f32 %v1767_v0, %v1768_v2 }
 0x4af   : > { %v1770_v4 = vand.u32 4294901760, %v1769_v3 }
 0x4b0   : > { %1391 = vmatmul.f32.vlgmr.msra.gmra.mxu2 %v1288_v58  ;;  %v1794_v58 = vand.u32 4294901760, %v1793_v53 }
 0x4b1   : > { %1597 = vmatpush.msra.mxu2 %v1596_v11 }
 0x4b3   : > { %1599 = vmatpush.msra.mxu2 %v1598_v15 }
 0x51f   : > { %v1344_v31 = vpop.f32.mrf.mxu0 }
 0x521   : > { %v1368_v36 = vpop.f32.mrf.mxu1 }
 0x523   : > { %v1320_v28 = vpop.f32.mrf.mxu3 }
 0x52b   : > { %v1294_v29 = vpop.f32.mrf.mxu2  ;;  %v1414_v43 = vpop.f32.mrf.mxu3 }
 0x52c   : > { %v1321_v30 = vadd.f32 %v1320_v28, %v1294_v29 }
 0x52e   : > { %v1345_v32 = vadd.f32 %v1344_v31, %v1321_v30 }
 0x530   : > { %v1369_v38 = vadd.f32 %v1368_v36, %v1345_v32 }
 0x533   : > { %v1392_v40 = vpop.f32.mrf.mxu2 }
 0x534   : > { %v1393_v42 = vadd.f32 %v1392_v40, %v1369_v38 }
 0x536   : > { %v1415_v46 = vadd.f32 %v1414_v43, %v1393_v42 }
 0x538   : > { %v1418_v49 = vsel %vm759_vm1, %v1415_v46, 0 }
 0x539   : > { %v1438_v50 = vand.u32 4294901760, %v1418_v49 }
 0x53b   : > { %v1439_v45 = vsub.f32 %v1418_v49, %v1438_v50  ;;  %1474 = vmatmul.f32.vlgmr.msrb.gmra.mxu1 %v1438_v50 }
 0x53c   : > { %1681 = vmatpush.msrb.mxu1 %v1596_v11 }
 0x53d   : > { %1500 = vmatmul.f32.vlgmr.msrb.gmra.mxu2 %v1439_v45  ;;  %v1440_v17 = vand.u32 4294901760, %v1439_v45 }
 0x53e   : > { %1683 = vmatpush.msrb.mxu1 %v1598_v15  ;;  %1708 = vmatpush.msrb.mxu2 %v1625_v16 }
 0x53f   : > { %1525 = vmatmul.f32.vlgmr.msrb.gmra.mxu3 %v1440_v17  ;;  %v1441_v55 = vsub.f32 %v1439_v45, %v1440_v17 }
 0x540   : > { %1712 = vmatpush.msrb.mxu2 %v1631_v20  ;;  %1733 = vmatpush.msrb.mxu3 %v1596_v11 }
 0x541   : > { %v1442_v57 = vand.u32 4294901760, %v1441_v55 }
 0x542   : > { %1735 = vmatpush.msrb.mxu3 %v1598_v15 }
 0x543   : > { %1443 = vmatmul.f32.vlgmr.msrb.gmra.mxu0 %v1442_v57  ;;  %1575 = vmatmul.f32.vlgmr.msra.gmra.mxu1 %v1438_v50 }
 0x544   : > { %1795 = vmatpush.xpose.msra.mxu1 %v1794_v58  ;;  %1656 = vmatpush.msrb.mxu0 %v1624_v14 }
 0x545   : > { %1605 = vmatmul.f32.vlgmr.msra.gmra.mxu2 %v1604_v60 }
 0x546   : > { %1818 = vmatpush.xpose.msra.mxu2 %v1791_v44  ;;  %1659 = vmatpush.msrb.mxu0 %v1630_v18 }
 0x547   : > { %1636 = vmatmul.f32.vlgmr.msra.gmra.mxu3 %v1600_v39 }
 0x548   : > { %1841 = vmatpush.xpose.msra.mxu3 %v1764_v37 }
 0x54b   : > { %1552 = vmatmul.f32.vlgmr.msra.gmra.mxu0 %v1438_v50  ;;  %1687 = vmatmul.f32.vlgmr.msrb.gmra.mxu1 %v1602_v48  ;;  %v270_v48 = vld [vmem:[#allocation7 + $0x28] sm:$0xff] }
 0x54c   : > { %1765 = vmatpush.xpose.msra.mxu0 %v1764_v37  ;;  %1889 = vmatpush.xpose.msrb.mxu1 %v1764_v37  ;;  %v2089_v53 = vand.u32 4294901760, %v270_v48 }
 0x54d   : > { %1714 = vmatmul.f32.vlgmr.msrb.gmra.mxu2 %v1600_v39 }
 0x54e   : > { %1942 = vmatpush.msrb.mxu2 %v1941_v54 }
 0x54f   : > { %1737 = vmatmul.f32.vlgmr.msrb.gmra.mxu3 %v1600_v39 }
 0x550   : > { %1972 = vmatpush.msrb.mxu3 %v1971_v1 }
 0x553   : > { %1662 = vmatmul.f32.vlgmr.msrb.gmra.mxu0 %v1601_v47  ;;  %1797 = vmatmul.f32.vlgmr.msra.gmra.mxu1 %v1766_v62 }
 0x554   : > { %1867 = vmatpush.xpose.msrb.mxu0 %v1792_v51  ;;  %2018 = vmatpush.msra.mxu1 %v1941_v54 }
 0x555   : > { %1821 = vmatmul.f32.vlgmr.msra.gmra.mxu2 %v1767_v0 }
 0x556   : > { %2044 = vmatpush.msra.mxu2 %v1969_v41 }
 0x557   : > { %1845 = vmatmul.f32.vlgmr.msra.gmra.mxu3 %v1768_v2 }
 0x558   : > { %2066 = vmatpush.msra.mxu3 %v1941_v54  ;;  %v269_v54 = vld [vmem:[#allocation7 + $0x20] sm:$0xff] }
 0x559   : > { %v2091_v55 = vand.u32 4294901760, %v269_v54 }
 0x55b   : > { %1771 = vmatmul.f32.vlgmr.msra.gmra.mxu0 %v1770_v4  ;;  %1891 = vmatmul.f32.vlgmr.msrb.gmra.mxu1 %v1766_v62 }
 0x55c   : > { %1995 = vmatpush.msra.mxu0 %v1968_v59 }
 0x563   : > { %1869 = vmatmul.f32.vlgmr.msrb.gmra.mxu0 %v1766_v62 }
 0x564   : > { %2090 = vmatpush.msrb.mxu0 %v2089_v53 }
 0x566   : > { %2092 = vmatpush.msrb.mxu0 %v2091_v55 }
 0x5b8   : > { %v1475_v5 = vpop.f32.mrf.mxu1 }
 0x5c0   : > { %v1444_v6 = vpop.f32.mrf.mxu0  ;;  %v1501_v7 = vpop.f32.mrf.mxu2 }
 0x5c1   : > { %v1476_v8 = vadd.f32 %v1475_v5, %v1444_v6  ;;  %v1576_v12 = vpop.f32.mrf.mxu1 }
 0x5c2   : > { %v1526_v10 = vpop.f32.mrf.mxu3 }
 0x5c3   : > { %v1502_v11 = vadd.f32 %v1501_v7, %v1476_v8 }
 0x5c5   : > { %v1527_v13 = vadd.f32 %v1526_v10, %v1502_v11  ;;  %v2117_v10 = vsub.f32 %v270_v48, %v2089_v53 }
 0x5c8   : > { %v1553_v14 = vpop.f32.mrf.mxu0  ;;  %v1606_v15 = vpop.f32.mrf.mxu2 }
 0x5c9   : > { %v1554_v16 = vadd.f32 %v1553_v14, %v1527_v13  ;;  %v1688_v21 = vpop.f32.mrf.mxu1  ;;  %v2123_v13 = vsub.f32 %v269_v54, %v2091_v55 }
 0x5ca   : > { %v1637_v18 = vpop.f32.mrf.mxu3 }
 0x5cb   : > { %v1577_v19 = vadd.f32 %v1576_v12, %v1554_v16  ;;  %v2118_v16 = vand.u32 4294901760, %v2117_v10 }
 0x5cd   : > { %v1607_v20 = vadd.f32 %v1606_v15, %v1577_v19  ;;  %v2124_v19 = vand.u32 4294901760, %v2123_v13 }
 0x5cf   : > { %v1638_v24 = vadd.f32 %v1637_v18, %v1607_v20  ;;  %v2119_v18 = vsub.f32 %v2117_v10, %v2118_v16 }
 0x5d0   : > { %v1663_v25 = vpop.f32.mrf.mxu0  ;;  %v1715_v26 = vpop.f32.mrf.mxu2 }
 0x5d1   : > { %v1664_v28 = vadd.f32 %v1663_v25, %v1638_v24  ;;  %v1798_v33 = vpop.f32.mrf.mxu1  ;;  %v2120_v20 = vand.u32 4294901760, %v2119_v18 }
 0x5d2   : > { %v1738_v30 = vpop.f32.mrf.mxu3 }
 0x5d3   : > { %v1689_v29 = vadd.f32 %v1688_v21, %v1664_v28  ;;  %v2125_v21 = vsub.f32 %v2123_v13, %v2124_v19  ;;  %2121 = vmatpush.msrb.mxu1 %v2120_v20 }
 0x5d5   : > { %v1716_v31 = vadd.f32 %v1715_v26, %v1689_v29  ;;  %v2126_v24 = vand.u32 4294901760, %v2125_v21  ;;  %v2236_v29 = vpop.permute.xlu0 %2235 }
 0x5d7   : > { %v3484_v32 = vadd.f32 %v1738_v30, %v1716_v31  ;;  %2127 = vmatpush.msrb.mxu1 %v2126_v24 }
 0x5d8   : > { %v1772_v34 = vpop.f32.mrf.mxu0  ;;  %v1822_v36 = vpop.f32.mrf.mxu2 }
 0x5d9   : > { %v1799_v35 = vadd.f32 %v1798_v33, %v1772_v34  ;;  %v1892_v43 = vpop.f32.mrf.mxu1  ;;  %v2239_v34 = vsel %vm759_vm1, %v2236_v29, 0 }
 0x5da   : > { %v1846_v38 = vpop.f32.mrf.mxu3 }
 0x5db   : > { %v1823_v37 = vadd.f32 %v1822_v36, %v1799_v35 }
 0x5dd   : > { %v1847_v39 = vadd.f32 %v1846_v38, %v1823_v37  ;;  %v2260_v38 = vand.u32 4294901760, %v2239_v34 }
 0x5e0   : > { %v1870_v40 = vpop.f32.mrf.mxu0 }
 0x5e1   : > { %v1871_v42 = vadd.f32 %v1870_v40, %v1847_v39 }
 0x5e3   : > { %v1893_v44 = vadd.f32 %v1892_v43, %v1871_v42 }
 0x5e5   : > { %v1895_v46 = vsel %vm755_vm2, %v1893_v44, -1e+30 }
 0x5e6   : > { %v1896_v47 = vsel %vm911_vm3, %v1895_v46, -inf }
 0x5e7   : > { %1897 = vmax.xlane.f32.xlu2 %v1896_v47 }
 0x5ff   : > { %2414 = vrot.lane.b32.xlu2 %v3445_v9, %s3123_s7 }
 0x65a   : > { %v1898_v49 = vpop.xlane.xlu2 %1897 }
 0x65b   : > { %v1899_v50 = vsub.f32 %v1895_v46, %v1898_v49  ;;  %v2261_v46 = vsub.f32 %v2239_v34, %v2260_v38 }
 0x65d   : > { %v1900_v51 = vmul.f32 1.442695, %v1899_v50 }
 0x65f   : > { %2943 = vpow2.f32 %v1900_v51  ;;  %v2262_v51 = vand.u32 4294901760, %v2261_v46 }
 0x662   : > { %v2415_v33 = vpop.permute.xlu2 %2414 }
 0x663   : > { %v2435_v36 = vand.u32 4294901760, %v2415_v33 }
 0x665   : > { %v2944_v52 = vpop.eup %2943  ;;  %v2462_v43 = vsub.f32 %v2415_v33, %v2435_v36 }
 0x666   : > { %v1902_v45 = vsel %vm911_vm3, %v2944_v52, 0.0 }
 0x667   : > { %1903 = vadd.xlane.f32.xlu1 %v1902_v45  ;;  %v2463_v50 = vand.u32 4294901760, %v2462_v43 }
 0x669   : > { %v2464_v48 = vsub.f32 %v2462_v43, %v2463_v50 }
 0x680   : > { %2237 = vrot.lane.b32.xlu1 %v3417_v27, %s3125_s9 }
 0x6da   : > { %v1904_v17 = vpop.xlane.xlu1 %1903 }
 0x6db   : > { %2945 = vrcp.f32 %v1904_v17  ;;  %v1916_v58 = vand.u32 2147483648, %v1904_v17  ;;  %v1914_v60 = vand.u32 2147483647, %v1904_v17  ;;  %vm1910_vm13 = vweird.f32 %v1904_v17 }
 0x6dd   : > { %v1917_v41 = vor.u32 1.1754944e-38, %v1916_v58  ;;  %vm1915_vm15 = vcmp.eq.f32.partialorder %v1914_v60, 8.507059e+37 }
 0x6e1   : > { %v2946_v9 = vpop.eup %2945 }
 0x6e2   : > { %v1906_v56 = vmul.f32 %v2946_v9, %v1904_v17  ;;  %vm1911_vm12 = vweird.f32 %v2946_v9  ;;  %v2263_v17 = vsub.f32 %v2261_v46, %v2262_v51 }
 0x6e3   : > { %vm1912_vm14 = vmor %vm1910_vm13, %vm1911_vm12 }
 0x6e4   : > { %v1907_v57 = vsub.f32 1.0, %v1906_v56 }
 0x6e6   : > { %v1908_v59 = vmul.f32 %v2946_v9, %v1907_v57 }
 0x6e8   : > { %v1909_v61 = vadd.f32 %v2946_v9, %v1908_v59 }
 0x6ea   : > { %v1913_v27 = vsel %vm1912_vm14, %v2946_v9, %v1909_v61  ;;  %v2264_v9 = vand.u32 4294901760, %v2263_v17 }
 0x6eb   : > { %v1918_v62 = vsel %vm1915_vm15, %v1917_v41, %v1913_v27 }
 0x6ec   : > { %v1919_v63 = vmul.f32 %v2944_v52, %v1918_v62 }
 0x6ee   : > { %v1924_v0 = vsel %vm911_vm3, %v1919_v63, 0 }
 0x6ef   : > { %v1943_v1 = vand.u32 4294901760, %v1924_v0 }
 0x6f1   : > { %1974 = vmatmul.f32.vlgmr.msrb.gmra.mxu3 %v1943_v1  ;;  %v1944_v2 = vsub.f32 %v1924_v0, %v1943_v1 }
 0x6f2   : > { %v2238_v3 = vpop.permute.xlu1 %2237  ;;  %2174 = vmatpush.msrb.mxu3 %v2089_v53 }
 0x6f3   : > { %v2241_v4 = vsel %vm759_vm1, %v2238_v3, 0  ;;  %1998 = vmatmul.f32.vlgmr.msra.gmra.mxu0 %v1944_v2  ;;  %v1945_v5 = vand.u32 4294901760, %v1944_v2 }
 0x6f4   : > { %v2258_v6 = vand.u32 4294901760, %v2241_v4  ;;  %2176 = vmatpush.msrb.mxu3 %v2091_v55  ;;  %2201 = vmatpush.msra.mxu0 %v2118_v16 }
 0x6f5   : > { %2022 = vmatmul.f32.vlgmr.msra.gmra.mxu1 %v1945_v5  ;;  %v1946_v7 = vsub.f32 %v1944_v2, %v1945_v5 }
 0x6f6   : > { %v3496_v8 = vsub.f32 %v2241_v4, %v2258_v6  ;;  %2205 = vmatpush.msra.mxu0 %v2124_v19  ;;  %2226 = vmatpush.msra.mxu1 %v2089_v53 }
 0x6f7   : > { %v1947_v11 = vand.u32 4294901760, %v1946_v7 }
 0x6f8   : > { %v2286_v12 = vand.u32 4294901760, %v3496_v8  ;;  %2228 = vmatpush.msra.mxu1 %v2091_v55  ;;  %v2465_v55 = vand.u32 4294901760, %v2464_v48 }
 0x6f9   : > { %1948 = vmatmul.f32.vlgmr.msrb.gmra.mxu2 %v1947_v11  ;;  %2068 = vmatmul.f32.vlgmr.msra.gmra.mxu3 %v1943_v1 }
 0x6fa   : > { %v2287_v14 = vsub.f32 %v3496_v8, %v2286_v12  ;;  %2149 = vmatpush.msrb.mxu2 %v2117_v10 }
 0x6fc   : > { %v2288_v15 = vand.u32 4294901760, %v2287_v14  ;;  %2152 = vmatpush.msrb.mxu2 %v2123_v13 }
 0x6fe   : > { %2289 = vmatpush.xpose.msra.mxu3 %v2288_v15 }
 0x701   : > { %2046 = vmatmul.f32.vlgmr.msra.gmra.mxu2 %v1943_v1 }
 0x702   : > { %2259 = vmatpush.xpose.msra.mxu2 %v2258_v6 }
 0x770   : > { %v1999_v30 = vpop.f32.mrf.mxu0 }
 0x772   : > { %v2023_v35 = vpop.f32.mrf.mxu1 }
 0x774   : > { %v1975_v25 = vpop.f32.mrf.mxu3 }
 0x77c   : > { %v1949_v26 = vpop.f32.mrf.mxu2  ;;  %v2069_v42 = vpop.f32.mrf.mxu3 }
 0x77d   : > { %v1976_v28 = vadd.f32 %v1975_v25, %v1949_v26 }
 0x77f   : > { %v2000_v31 = vadd.f32 %v1999_v30, %v1976_v28 }
 0x781   : > { %v2024_v37 = vadd.f32 %v2023_v35, %v2000_v31 }
 0x784   : > { %v2047_v39 = vpop.f32.mrf.mxu2 }
 0x785   : > { %v2048_v40 = vadd.f32 %v2047_v39, %v2024_v37 }
 0x787   : > { %v2070_v44 = vadd.f32 %v2069_v42, %v2048_v40  ;;  %v272_v42 = vld [vmem:[#allocation7 + $0x38] sm:$0xff] }
 0x789   : > { %v2073_v47 = vsel %vm759_vm1, %v2070_v44, 0  ;;  %v271_v44 = vld [vmem:[#allocation7 + $0x30] sm:$0xff] }
 0x78a   : > { %v2093_v49 = vand.u32 4294901760, %v2073_v47 }
 0x78c   : > { %v2094_v52 = vsub.f32 %v2073_v47, %v2093_v49  ;;  %2129 = vmatmul.f32.vlgmr.msrb.gmra.mxu1 %v2093_v49  ;;  %v2585_v47 = vand.u32 4294901760, %v271_v44 }
 0x78d   : > { %2335 = vmatpush.xpose.msrb.mxu1 %v2258_v6 }
 0x78e   : > { %2155 = vmatmul.f32.vlgmr.msrb.gmra.mxu2 %v2094_v52  ;;  %v2095_v45 = vand.u32 4294901760, %v2094_v52 }
 0x78f   : > { %2361 = vmatpush.xpose.msrb.mxu2 %v2286_v12 }
 0x790   : > { %2180 = vmatmul.f32.vlgmr.msrb.gmra.mxu3 %v2095_v45  ;;  %v2096_v53 = vsub.f32 %v2094_v52, %v2095_v45 }
 0x791   : > { %2383 = vmatpush.xpose.msrb.mxu3 %v2258_v6 }
 0x792   : > { %v2097_v54 = vand.u32 4294901760, %v2096_v53 }
 0x794   : > { %2098 = vmatmul.f32.vlgmr.msrb.gmra.mxu0 %v2097_v54  ;;  %2230 = vmatmul.f32.vlgmr.msra.gmra.mxu1 %v2093_v49 }
 0x795   : > { %2312 = vmatpush.xpose.msrb.mxu0 %v3496_v8  ;;  %2466 = vmatpush.msra.mxu1 %v2465_v55 }
 0x796   : > { %2265 = vmatmul.f32.vlgmr.msra.gmra.mxu2 %v2264_v9 }
 0x797   : > { %2489 = vmatpush.msra.mxu2 %v2462_v43  ;;  %v2583_v43 = vand.u32 4294901760, %v272_v42 }
 0x798   : > { %2291 = vmatmul.f32.vlgmr.msra.gmra.mxu3 %v2260_v38 }
 0x799   : > { %2512 = vmatpush.msra.mxu3 %v2435_v36 }
 0x79c   : > { %2207 = vmatmul.f32.vlgmr.msra.gmra.mxu0 %v2093_v49  ;;  %2339 = vmatmul.f32.vlgmr.msrb.gmra.mxu1 %v2262_v51 }
 0x79d   : > { %2436 = vmatpush.msra.mxu0 %v2435_v36  ;;  %2560 = vmatpush.msrb.mxu1 %v2435_v36 }
 0x79e   : > { %2363 = vmatmul.f32.vlgmr.msrb.gmra.mxu2 %v2260_v38 }
 0x79f   : > { %2584 = vmatpush.msrb.mxu2 %v2583_v43 }
 0x7a0   : > { %2385 = vmatmul.f32.vlgmr.msrb.gmra.mxu3 %v2260_v38 }
 0x7a1   : > { %2586 = vmatpush.msrb.mxu2 %v2585_v47 }
 0x7a4   : > { %2315 = vmatmul.f32.vlgmr.msrb.gmra.mxu0 %v2261_v46  ;;  %v2611_v46 = vsub.f32 %v272_v42, %v2583_v43 }
 0x7a5   : > { %2538 = vmatpush.msrb.mxu0 %v2463_v50  ;;  %v2617_v50 = vsub.f32 %v271_v44, %v2585_v47 }
 0x7a6   : > { %v2612_v49 = vand.u32 4294901760, %v2611_v46 }
 0x7a7   : > { %v2618_v52 = vand.u32 4294901760, %v2617_v50 }
 0x7a8   : > { %v2613_v51 = vsub.f32 %v2611_v46, %v2612_v49 }
 0x7a9   : > { %v2619_v48 = vsub.f32 %v2617_v50, %v2618_v52 }
 0x7aa   : > { %v2614_v45 = vand.u32 4294901760, %v2613_v51 }
 0x7ab   : > { %v2620_v17 = vand.u32 4294901760, %v2619_v48 }
 0x7ac   : > { %2615 = vmatpush.msrb.mxu3 %v2614_v45 }
 0x7ae   : > { %2621 = vmatpush.msrb.mxu3 %v2620_v17 }
 0x809   : > { %v2130_v56 = vpop.f32.mrf.mxu1 }
 0x811   : > { %v2099_v57 = vpop.f32.mrf.mxu0  ;;  %v2156_v58 = vpop.f32.mrf.mxu2 }
 0x812   : > { %v2131_v59 = vadd.f32 %v2130_v56, %v2099_v57  ;;  %v2231_v27 = vpop.f32.mrf.mxu1 }
 0x813   : > { %v2181_v60 = vpop.f32.mrf.mxu3 }
 0x814   : > { %v2157_v61 = vadd.f32 %v2156_v58, %v2131_v59 }
 0x816   : > { %v2182_v41 = vadd.f32 %v2181_v60, %v2157_v61 }
 0x819   : > { %v2208_v62 = vpop.f32.mrf.mxu0  ;;  %v2266_v0 = vpop.f32.mrf.mxu2 }
 0x81a   : > { %v2209_v63 = vadd.f32 %v2208_v62, %v2182_v41  ;;  %v2340_v7 = vpop.f32.mrf.mxu1 }
 0x81b   : > { %v2292_v2 = vpop.f32.mrf.mxu3 }
 0x81c   : > { %v2232_v1 = vadd.f32 %v2231_v27, %v2209_v63  ;;  %v2293_v4 = vadd.f32 %v2292_v2, %v2266_v0 }
 0x81e   : > { %v3504_v3 = vadd.f32 %v2232_v1, %v3484_v32 }
 0x821   : > { %v2316_v5 = vpop.f32.mrf.mxu0  ;;  %v2364_v10 = vpop.f32.mrf.mxu2 }
 0x822   : > { %v2317_v6 = vadd.f32 %v2316_v5, %v2293_v4 }
 0x823   : > { %v2386_v12 = vpop.f32.mrf.mxu3 }
 0x824   : > { %v2341_v8 = vadd.f32 %v2340_v7, %v2317_v6 }
 0x826   : > { %v2365_v11 = vadd.f32 %v2364_v10, %v2341_v8 }
 0x828   : > { %v2387_v13 = vadd.f32 %v2386_v12, %v2365_v11 }
 0x82a   : > { %v2389_v14 = vsel %vm755_vm2, %v2387_v13, -1e+30 }
 0x82b   : > { %v2390_v15 = vsel %vm911_vm3, %v2389_v14, -inf }
 0x82c   : > { %2391 = vmax.xlane.f32.xlu0 %v2390_v15 }
 0x89f   : > { %v2392_v16 = vpop.xlane.xlu0 %2391 }
 0x8a0   : > { %v2393_v18 = vsub.f32 %v2389_v14, %v2392_v16  ;;  %v2934_v16 = vld [vmem:[%s3556_s3] ss:$0 sm:$0xff] }
 0x8a2   : > { %v2394_v32 = vmul.f32 1.442695, %v2393_v18 }
 0x8a4   : > { %2947 = vpow2.f32 %v2394_v32 }
 0x8aa   : > { %v2948_v19 = vpop.eup %2947 }
 0x8ab   : > { %v2396_v20 = vsel %vm911_vm3, %v2948_v19, 0.0 }
 0x8ac   : > { %2397 = vadd.xlane.f32.xlu1 %v2396_v20 }
 0x91f   : > { %v2398_v21 = vpop.xlane.xlu1 %2397 }
 0x920   : > { %2949 = vrcp.f32 %v2398_v21  ;;  %v2410_v28 = vand.u32 2147483648, %v2398_v21  ;;  %v2408_v22 = vand.u32 2147483647, %v2398_v21  ;;  %vm2404_vm2 = vweird.f32 %v2398_v21 }
 0x922   : > { %v2411_v30 = vor.u32 1.1754944e-38, %v2410_v28  ;;  %vm2409_vm6 = vcmp.eq.f32.partialorder %v2408_v22, 8.507059e+37 }
 0x926   : > { %v2950_v24 = vpop.eup %2949 }
 0x927   : > { %v2400_v25 = vmul.f32 %v2950_v24, %v2398_v21  ;;  %vm2405_vm4 = vweird.f32 %v2950_v24 }
 0x928   : > { %vm2406_vm5 = vmor %vm2404_vm2, %vm2405_vm4 }
 0x929   : > { %v2401_v26 = vsub.f32 1.0, %v2400_v25 }
 0x92b   : > { %v2402_v29 = vmul.f32 %v2950_v24, %v2401_v26 }
 0x92d   : > { %v2403_v23 = vadd.f32 %v2950_v24, %v2402_v29 }
 0x92f   : > { %v2407_v31 = vsel %vm2406_vm5, %v2950_v24, %v2403_v23 }
 0x930   : > { %v2412_v33 = vsel %vm2409_vm6, %v2411_v30, %v2407_v31 }
 0x931   : > { %v2413_v34 = vmul.f32 %v2948_v19, %v2412_v33 }
 0x933   : > { %v2418_v35 = vsel %vm911_vm3, %v2413_v34, 0 }
 0x934   : > { %v2437_v36 = vand.u32 4294901760, %v2418_v35 }
 0x936   : > { %2468 = vmatmul.f32.vlgmr.msra.gmra.mxu1 %v2437_v36  ;;  %v2438_v37 = vsub.f32 %v2418_v35, %v2437_v36 }
 0x937   : > { %2668 = vmatpush.msra.mxu1 %v2583_v43 }
 0x938   : > { %2492 = vmatmul.f32.vlgmr.msra.gmra.mxu2 %v2438_v37  ;;  %v2439_v38 = vand.u32 4294901760, %v2438_v37 }
 0x939   : > { %2670 = vmatpush.msra.mxu1 %v2585_v47  ;;  %2695 = vmatpush.msra.mxu2 %v2612_v49 }
 0x93a   : > { %2516 = vmatmul.f32.vlgmr.msra.gmra.mxu3 %v2439_v38  ;;  %v2440_v39 = vsub.f32 %v2438_v37, %v2439_v38 }
 0x93b   : > { %2699 = vmatpush.msra.mxu2 %v2618_v52  ;;  %2720 = vmatpush.msra.mxu3 %v2583_v43 }
 0x93c   : > { %v2441_v40 = vand.u32 4294901760, %v2440_v39 }
 0x93d   : > { %2722 = vmatpush.msra.mxu3 %v2585_v47 }
 0x93e   : > { %2442 = vmatmul.f32.vlgmr.msra.gmra.mxu0 %v2441_v40  ;;  %2562 = vmatmul.f32.vlgmr.msrb.gmra.mxu1 %v2437_v36 }
 0x93f   : > { %2643 = vmatpush.msra.mxu0 %v2611_v46 }
 0x941   : > { %2646 = vmatpush.msra.mxu0 %v2617_v50 }
 0x946   : > { %2540 = vmatmul.f32.vlgmr.msrb.gmra.mxu0 %v2437_v36 }
 0x9b3   : > { %v2469_v53 = vpop.f32.mrf.mxu1 }
 0x9bb   : > { %v2443_v54 = vpop.f32.mrf.mxu0  ;;  %v2493_v9 = vpop.f32.mrf.mxu2 }
 0x9bc   : > { %v2470_v55 = vadd.f32 %v2469_v53, %v2443_v54  ;;  %v2563_v61 = vpop.f32.mrf.mxu1 }
 0x9bd   : > { %v2517_v57 = vpop.f32.mrf.mxu3 }
 0x9be   : > { %v2494_v56 = vadd.f32 %v2493_v9, %v2470_v55 }
 0x9c0   : > { %v2518_v58 = vadd.f32 %v2517_v57, %v2494_v56 }
 0x9c3   : > { %v2541_v59 = vpop.f32.mrf.mxu0 }
 0x9c4   : > { %v2542_v60 = vadd.f32 %v2541_v59, %v2518_v58 }
 0x9c6   : > { %v2564_v41 = vadd.f32 %v2563_v61, %v2542_v60 }
 0x9c8   : > { %v2567_v27 = vsel %vm759_vm1, %v2564_v41, 0 }
 0x9c9   : > { %v2587_v62 = vand.u32 4294901760, %v2567_v27 }
 0x9cb   : > { %v2588_v63 = vsub.f32 %v2567_v27, %v2587_v62  ;;  %2623 = vmatmul.f32.vlgmr.msrb.gmra.mxu3 %v2587_v62 }
 0x9cd   : > { %2649 = vmatmul.f32.vlgmr.msra.gmra.mxu0 %v2588_v63  ;;  %v2589_v0 = vand.u32 4294901760, %v2588_v63 }
 0x9cf   : > { %2674 = vmatmul.f32.vlgmr.msra.gmra.mxu1 %v2589_v0  ;;  %v2590_v1 = vsub.f32 %v2588_v63, %v2589_v0 }
 0x9d1   : > { %v2591_v2 = vand.u32 4294901760, %v2590_v1 }
 0x9d3   : > { %2592 = vmatmul.f32.vlgmr.msrb.gmra.mxu2 %v2591_v2  ;;  %2724 = vmatmul.f32.vlgmr.msra.gmra.mxu3 %v2587_v62 }
 0x9db   : > { %2701 = vmatmul.f32.vlgmr.msra.gmra.mxu2 %v2587_v62 }
 0xa4a   : > { %v2650_v7 = vpop.f32.mrf.mxu0 }
 0xa4c   : > { %v2675_v10 = vpop.f32.mrf.mxu1 }
 0xa4e   : > { %v2624_v4 = vpop.f32.mrf.mxu3 }
 0xa56   : > { %v2593_v5 = vpop.f32.mrf.mxu2  ;;  %v2725_v14 = vpop.f32.mrf.mxu3 }
 0xa57   : > { %v2625_v6 = vadd.f32 %v2624_v4, %v2593_v5 }
 0xa59   : > { %v2651_v8 = vadd.f32 %v2650_v7, %v2625_v6 }
 0xa5b   : > { %v2676_v11 = vadd.f32 %v2675_v10, %v2651_v8 }
 0xa5e   : > { %v2702_v12 = vpop.f32.mrf.mxu2 }
 0xa5f   : > { %v2703_v13 = vadd.f32 %v2702_v12, %v2676_v11 }
 0xa61   : > { %v2726_v15 = vadd.f32 %v2725_v14, %v2703_v13 }
 0xa63   : > { %v2728_v18 = vadd.f32 %v2726_v15, %v3504_v3 }
 0xa65   : > { %v2733_v32 = vadd.f32 %v2934_v16, %v2728_v18 }
 0xa67   : > { %2734 = vst.msk [vmem:[%s247_s29] sm:$0xff] %vm273_vm0, %v2733_v32 }
 0xa68   : > { %3068 = shalt.err (!%p3065_p9)
}
 0xa69   : > { %2866 = dma.vmem_to_hbm [thread:$0]  (%p3220_p4), %s2749_s30, 128, %s2751_s23, %s2736_s22  }
 0xa6a PF: > { %s2762_s20 = sand.u32 1, %s3099_s15   ;;  %p3564_p10 = scmp.ge.s32.totalorder %s3111_s18, 2 }
 0xa6b   : > { %s2763_s11 = scalar_lea.sflag [#allocation4], %s2762_s20 }
 0xa6c   : > { %p2880_p13 = pnand %p3564_p10, %p3224_p6 }
 0xa6e   : > { %p2881_p11 = pneg %p2880_p13 }
 0xa70   : > { %3094 = dma.done.wait (%p2881_p11), %s2763_s11, 128  }
 0xa71   : > { %3096 = vsyncadd (%p2881_p11), %s2763_s11, 4294967168  ;;  %p18_p0 = scmp.ge.s32.totalorder %s3194_s10, 4   ;;  %s3565_s15 = smov %s3103_s16 }
 0xa72   : > { %s3566_s16 = smov %s3107_s17  ;;  %s3567_s17 = smov %s3205_s13 }
 0xa73   : > { %s3568_s18 = smov %s3194_s10  ;;  %20 = sbr.rel (!%p18_p0) target bundleno = 6 (0x6), region = 89 }
 0xa78   :  { %2769 = vsyncpa [#allocation3], 1 }
 0xa79   :  { %2771 = vsyncpa [#allocation3 + $0x1], 1 }
 0xa7a   :  { %2772 = vsyncpa [#allocation6], 1 }
 0xa7b   :  { %2773 = vsyncpa [#allocation4], 1 }
 0xa7c   :  { %2775 = vsyncpa [#allocation4 + $0x1], 1 }

</bundles_post_ra>
